<compile_context>
chip_gen: v6e
topology: v6e:2x2x1
jax: 0.10.0
libtpu: 0.0.40
codegen_flags: <defaults>
</compile_context>

<pallas_src>
import functools
import math

import jax
import jax.numpy as jnp
from jax.experimental import pallas as pl
from jax.experimental.pallas import tpu as pltpu


# --------------------------------------------------------------------------------------
# Fused kernel: one grid step == one batch element, all intermediates live in VMEM.
# --------------------------------------------------------------------------------------
def _block_kernel(
    x_ref, ctx_ref,
    ln1_w_ref, ln1_b_ref, wqkv1_ref, wo1_ref, bo1_ref,
    ln2_w_ref, ln2_b_ref, wq2_ref, wkv2_ref, wo2_ref, bo2_ref,
    ln3_w_ref, ln3_b_ref, wff1_ref, bff1_ref, wff2_ref, bff2_ref,
    o_ref,
    *, heads, head_dim, ff_inner, eps,
):
    inner = heads * head_dim

    def layernorm(v, w_ref, b_ref):
        m = jnp.mean(v, axis=-1, keepdims=True)
        var = jnp.mean((v - m) ** 2, axis=-1, keepdims=True)
        return (v - m) * jax.lax.rsqrt(var + eps) * w_ref[...] + b_ref[...]

    def attention(q_all, k_all, v_all, wo_ref, bo_ref):
        # q_all: (Nq, H*Dh); k_all / v_all: (Nk, H*Dh).  Heads stay folded on lanes.
        scale = head_dim ** -0.5
        wo = wo_ref[...]                                    # (inner, D)
        out = None
        for h in range(heads):                              # static unrolled loop
            lo, hi = h * head_dim, (h + 1) * head_dim
            qh = q_all[:, lo:hi] * scale                    # fold softmax scale into Q
            kh = k_all[:, lo:hi]
            vh = v_all[:, lo:hi]
            s = jnp.dot(qh, kh.T, preferred_element_type=jnp.float32)
            s = s - jnp.max(s, axis=-1, keepdims=True)
            p = jnp.exp(s)
            p = p * pl.reciprocal(jnp.sum(p, axis=-1, keepdims=True), approx=True)
            oh = jnp.dot(p, vh, preferred_element_type=jnp.float32)
            proj = jnp.dot(oh, wo[lo:hi, :], preferred_element_type=jnp.float32)
            out = proj if out is None else out + proj
        return out + bo_ref[...]

    x = x_ref[0].astype(jnp.float32)                        # (N, D)
    ctx = ctx_ref[0].astype(jnp.float32)                    # (M, C)

    # ---- attn1: self-attention + residual -------------------------------------------
    n1 = layernorm(x, ln1_w_ref, ln1_b_ref)
    qkv = jnp.dot(n1, wqkv1_ref[...], preferred_element_type=jnp.float32)   # (N, 3*inner)
    x = x + attention(qkv[:, :inner], qkv[:, inner:2 * inner],
                      qkv[:, 2 * inner:], wo1_ref, bo1_ref)

    # ---- attn2: cross-attention (context) + residual ---------------------------------
    n2 = layernorm(x, ln2_w_ref, ln2_b_ref)
    q2 = jnp.dot(n2, wq2_ref[...], preferred_element_type=jnp.float32)      # (N, inner)
    kv = jnp.dot(ctx, wkv2_ref[...], preferred_element_type=jnp.float32)    # (M, 2*inner)
    x = x + attention(q2, kv[:, :inner], kv[:, inner:], wo2_ref, bo2_ref)

    # ---- feed-forward: GEGLU -> Linear + residual -------------------------------------
    n3 = layernorm(x, ln3_w_ref, ln3_b_ref)
    y = jnp.dot(n3, wff1_ref[...], preferred_element_type=jnp.float32) + bff1_ref[...]
    hidden, gate = y[:, :ff_inner], y[:, ff_inner:]
    # exact (erf) GELU, matching torch.nn.functional.gelu default
    gelu_gate = 0.5 * gate * (1.0 + jax.lax.erf(gate * (1.0 / math.sqrt(2.0))))
    ff = jnp.dot(hidden * gelu_gate, wff2_ref[...],
                 preferred_element_type=jnp.float32) + bff2_ref[...]

    o_ref[0] = (x + ff).astype(o_ref.dtype)


# --------------------------------------------------------------------------------------
# Wrapper: one-time weight prep (fused QKV / KV, 2-D biases) + a single pallas_call.
# --------------------------------------------------------------------------------------
def basic_transformer_block(x, context, p, heads, head_dim, eps=1e-5):
    B, N, D = x.shape
    M, C = context.shape[1], context.shape[2]
    inner = heads * head_dim
    two_ff = p["ff1_w"].shape[1]
    ff_inner = two_ff // 2

    # Fuse Q|K|V (self-attn) and K|V (cross-attn) weights so each needs one matmul.
    wqkv1 = jnp.concatenate([p["q1_w"], p["k1_w"], p["v1_w"]], axis=1)   # (D, 3*inner)
    wkv2 = jnp.concatenate([p["k2_w"], p["v2_w"]], axis=1)               # (C, 2*inner)
    row = lambda v: v.reshape(1, -1)

    def w_spec(shape):
        return pl.BlockSpec(shape, lambda i, _s=shape: (0,) * len(_s))

    kernel = functools.partial(
        _block_kernel, heads=heads, head_dim=head_dim, ff_inner=ff_inner, eps=eps
    )

    # TODO(synk): for production SD sequence lengths / model dims, add flash-style KV
    # tiling (online softmax) and row/col tiling of the FF matmuls so tiles fit the
    # 32 MiB scoped / 64 MiB (v7x) VMEM budget; unnecessary at these small shapes.
    return pl.pallas_call(
        kernel,
        out_shape=jax.ShapeDtypeStruct((B, N, D), x.dtype),
        grid=(B,),
        in_specs=[
            pl.BlockSpec((1, N, D), lambda i: (i, 0, 0)),                 # x
            pl.BlockSpec((1, M, C), lambda i: (i, 0, 0)),                 # context
            w_spec((1, D)), w_spec((1, D)),                               # ln1 w/b
            w_spec((D, 3 * inner)), w_spec((inner, D)), w_spec((1, D)),   # qkv1, o1 w/b
            w_spec((1, D)), w_spec((1, D)),                               # ln2 w/b
            w_spec((D, inner)), w_spec((C, 2 * inner)),                   # q2, kv2
            w_spec((inner, D)), w_spec((1, D)),                           # o2 w/b
            w_spec((1, D)), w_spec((1, D)),                               # ln3 w/b
            w_spec((D, two_ff)), w_spec((1, two_ff)),                     # ff1 w/b
            w_spec((ff_inner, D)), w_spec((1, D)),                        # ff2 w/b
        ],
        out_specs=pl.BlockSpec((1, N, D), lambda i: (i, 0, 0)),
        compiler_params=pltpu.CompilerParams(dimension_semantics=("parallel",)),
    )(
        x, context,
        row(p["ln1_w"]), row(p["ln1_b"]), wqkv1, p["o1_w"], row(p["o1_b"]),
        row(p["ln2_w"]), row(p["ln2_b"]), p["q2_w"], wkv2, p["o2_w"], row(p["o2_b"]),
        row(p["ln3_w"]), row(p["ln3_b"]), p["ff1_w"], row(p["ff1_b"]),
        p["ff2_w"], row(p["ff2_b"]),
    )


# --------------------------------------------------------------------------------------
# Pure-JAX reference (for correctness checking of the Pallas implementation)
# --------------------------------------------------------------------------------------
def reference_block(x, context, p, heads, head_dim):
    def ln(x, w, b):
        m = x.mean(-1, keepdims=True)
        v = ((x - m) ** 2).mean(-1, keepdims=True)
        return (x - m) / jnp.sqrt(v + 1e-5) * w + b

    def attn(xq, ctx, wq, wk, wv, wo, bo):
        B, N, _ = xq.shape
        M = ctx.shape[1]
        q = (xq @ wq).reshape(B, N, heads, head_dim).transpose(0, 2, 1, 3)
        k = (ctx @ wk).reshape(B, M, heads, head_dim).transpose(0, 2, 1, 3)
        v = (ctx @ wv).reshape(B, M, heads, head_dim).transpose(0, 2, 1, 3)
        s = jnp.einsum("bhnd,bhmd->bhnm", q, k) * (head_dim ** -0.5)
        pr = jax.nn.softmax(s, axis=-1)
        o = jnp.einsum("bhnm,bhmd->bhnd", pr, v)
        o = o.transpose(0, 2, 1, 3).reshape(B, N, heads * head_dim)
        return o @ wo + bo

    n = ln(x, p["ln1_w"], p["ln1_b"])
    x = attn(n, n, p["q1_w"], p["k1_w"], p["v1_w"], p["o1_w"], p["o1_b"]) + x
    n = ln(x, p["ln2_w"], p["ln2_b"])
    x = attn(n, context, p["q2_w"], p["k2_w"], p["v2_w"], p["o2_w"], p["o2_b"]) + x
    n = ln(x, p["ln3_w"], p["ln3_b"])
    y = n @ p["ff1_w"] + p["ff1_b"]
    h, g = jnp.split(y, 2, axis=-1)
    ff = h * jax.nn.gelu(g, approximate=False)
    return ff @ p["ff2_w"] + p["ff2_b"] + x


# --------------------------------------------------------------------------------------
# Deterministic parameter init (weights as (in_features, out_features))
# --------------------------------------------------------------------------------------
def init_params(key, dim, heads, head_dim, cross_dim):
    inner = heads * head_dim
    ff_inner = 4 * dim
    ks = iter(jax.random.split(key, 32))

    def lin(din, dout, scale=0.05):
        return scale * jax.random.normal(next(ks), (din, dout), jnp.float32)

    def vec(d, scale=0.05):
        return scale * jax.random.normal(next(ks), (d,), jnp.float32)

    return {
        "ln1_w": 1.0 + vec(dim), "ln1_b": vec(dim),
        "q1_w": lin(dim, inner), "k1_w": lin(dim, inner), "v1_w": lin(dim, inner),
        "o1_w": lin(inner, dim), "o1_b": vec(dim),
        "ln2_w": 1.0 + vec(dim), "ln2_b": vec(dim),
        "q2_w": lin(dim, inner), "k2_w": lin(cross_dim, inner), "v2_w": lin(cross_dim, inner),
        "o2_w": lin(inner, dim), "o2_b": vec(dim),
        "ln3_w": 1.0 + vec(dim), "ln3_b": vec(dim),
        "ff1_w": lin(dim, 2 * ff_inner), "ff1_b": vec(2 * ff_inner),
        "ff2_w": lin(ff_inner, dim), "ff2_b": vec(dim),
    }


# --------------------------------------------------------------------------------------
if __name__ == "__main__":
    # BasicTransformerBlock(dim=32, num_attention_heads=4, attention_head_dim=8,
    #                       cross_attention_dim=24)
    dim, heads, head_dim, cross_dim = 32, 4, 8, 24
    B, N, M = 2, 16, 8   # batch, query tokens, context tokens

    key = jax.random.PRNGKey(0)
    kx, kc, kp = jax.random.split(key, 3)
    x = jax.random.normal(kx, (B, N, dim), jnp.float32)
    context = jax.random.normal(kc, (B, M, cross_dim), jnp.float32)
    params = init_params(kp, dim, heads, head_dim, cross_dim)

    out = basic_transformer_block(x, context, params, heads, head_dim)
    out = jax.block_until_ready(out)

    ref = reference_block(x, context, params, heads, head_dim)
    assert out.shape == (B, N, dim)
    # Slightly relaxed vs 1e-4 to leave headroom for the approx (EUP) softmax reciprocal.
    assert jnp.allclose(out, ref, atol=2e-4, rtol=2e-4), float(jnp.max(jnp.abs(out - ref)))

    print("KERNEL_OK")
</pallas_src>

<mosaic_0001>
module attributes {stable_mosaic.version = 11 : i64} {
  func.func @_block_kernel(%arg0: i32, %arg1: memref<1x16x32xf32, #tpu.memory_space<vmem>>, %arg2: memref<1x8x24xf32, #tpu.memory_space<vmem>>, %arg3: memref<1x32xf32, #tpu.memory_space<vmem>>, %arg4: memref<1x32xf32, #tpu.memory_space<vmem>>, %arg5: memref<32x96xf32, #tpu.memory_space<vmem>>, %arg6: memref<32x32xf32, #tpu.memory_space<vmem>>, %arg7: memref<1x32xf32, #tpu.memory_space<vmem>>, %arg8: memref<1x32xf32, #tpu.memory_space<vmem>>, %arg9: memref<1x32xf32, #tpu.memory_space<vmem>>, %arg10: memref<32x32xf32, #tpu.memory_space<vmem>>, %arg11: memref<24x64xf32, #tpu.memory_space<vmem>>, %arg12: memref<32x32xf32, #tpu.memory_space<vmem>>, %arg13: memref<1x32xf32, #tpu.memory_space<vmem>>, %arg14: memref<1x32xf32, #tpu.memory_space<vmem>>, %arg15: memref<1x32xf32, #tpu.memory_space<vmem>>, %arg16: memref<32x256xf32, #tpu.memory_space<vmem>>, %arg17: memref<1x256xf32, #tpu.memory_space<vmem>>, %arg18: memref<128x32xf32, #tpu.memory_space<vmem>>, %arg19: memref<1x32xf32, #tpu.memory_space<vmem>>, %arg20: memref<1x16x32xf32, #tpu.memory_space<vmem>>) attributes {dimension_semantics = [#tpu.dimension_semantics<parallel>], iteration_bounds = array<i64: 2>, scalar_prefetch = 0 : i64, scratch_operands = 0 : i64, tpu.core_type = #tpu.core_type<tc>, window_params = [{transform_indices = @transform_0, window_bounds = array<i64: 1, 16, 32>}, {transform_indices = @transform_1, window_bounds = array<i64: 1, 8, 24>}, {pipeline_mode = #tpu.pipeline_mode<synchronous>, transform_indices = @transform_2, window_bounds = array<i64: 1, 32>}, {pipeline_mode = #tpu.pipeline_mode<synchronous>, transform_indices = @transform_3, window_bounds = array<i64: 1, 32>}, {pipeline_mode = #tpu.pipeline_mode<synchronous>, transform_indices = @transform_4, window_bounds = array<i64: 32, 96>}, {pipeline_mode = #tpu.pipeline_mode<synchronous>, transform_indices = @transform_5, window_bounds = array<i64: 32, 32>}, {pipeline_mode = #tpu.pipeline_mode<synchronous>, transform_indices = @transform_6, window_bounds = array<i64: 1, 32>}, {pipeline_mode = #tpu.pipeline_mode<synchronous>, transform_indices = @transform_7, window_bounds = array<i64: 1, 32>}, {pipeline_mode = #tpu.pipeline_mode<synchronous>, transform_indices = @transform_8, window_bounds = array<i64: 1, 32>}, {pipeline_mode = #tpu.pipeline_mode<synchronous>, transform_indices = @transform_9, window_bounds = array<i64: 32, 32>}, {pipeline_mode = #tpu.pipeline_mode<synchronous>, transform_indices = @transform_10, window_bounds = array<i64: 24, 64>}, {pipeline_mode = #tpu.pipeline_mode<synchronous>, transform_indices = @transform_11, window_bounds = array<i64: 32, 32>}, {pipeline_mode = #tpu.pipeline_mode<synchronous>, transform_indices = @transform_12, window_bounds = array<i64: 1, 32>}, {pipeline_mode = #tpu.pipeline_mode<synchronous>, transform_indices = @transform_13, window_bounds = array<i64: 1, 32>}, {pipeline_mode = #tpu.pipeline_mode<synchronous>, transform_indices = @transform_14, window_bounds = array<i64: 1, 32>}, {pipeline_mode = #tpu.pipeline_mode<synchronous>, transform_indices = @transform_15, window_bounds = array<i64: 32, 256>}, {pipeline_mode = #tpu.pipeline_mode<synchronous>, transform_indices = @transform_16, window_bounds = array<i64: 1, 256>}, {pipeline_mode = #tpu.pipeline_mode<synchronous>, transform_indices = @transform_17, window_bounds = array<i64: 128, 32>}, {pipeline_mode = #tpu.pipeline_mode<synchronous>, transform_indices = @transform_18, window_bounds = array<i64: 1, 32>}, {transform_indices = @transform_19, window_bounds = array<i64: 1, 16, 32>}]} {
    %c0 = arith.constant 0 : index
    %c0_0 = arith.constant 0 : index
    %c0_1 = arith.constant 0 : index
    %0 = vector.load %arg1[%c0, %c0_0, %c0_1] : memref<1x16x32xf32, #tpu.memory_space<vmem>>, vector<1x16x32xf32>
    %1 = vector.shape_cast %0 : vector<1x16x32xf32> to vector<16x32xf32>
    %c0_2 = arith.constant 0 : index
    %c0_3 = arith.constant 0 : index
    %c0_4 = arith.constant 0 : index
    %2 = vector.load %arg2[%c0_2, %c0_3, %c0_4] : memref<1x8x24xf32, #tpu.memory_space<vmem>>, vector<1x8x24xf32>
    %3 = vector.shape_cast %2 : vector<1x8x24xf32> to vector<8x24xf32>
    %cst = arith.constant dense<0.000000e+00> : vector<16xf32>
    %4 = vector.multi_reduction <add>, %1, %cst [1] : vector<16x32xf32> to vector<16xf32>
    %5 = vector.shape_cast %4 : vector<16xf32> to vector<16x1xf32>
    %cst_5 = arith.constant 3.200000e+01 : f32
    %6 = vector.broadcast %cst_5 : f32 to vector<16x1xf32>
    %7 = arith.divf %5, %6 : vector<16x1xf32>
    %8 = vector.broadcast %7 : vector<16x1xf32> to vector<16x32xf32>
    %9 = arith.subf %1, %8 : vector<16x32xf32>
    %10 = arith.mulf %9, %9 : vector<16x32xf32>
    %cst_6 = arith.constant dense<0.000000e+00> : vector<16xf32>
    %11 = vector.multi_reduction <add>, %10, %cst_6 [1] : vector<16x32xf32> to vector<16xf32>
    %12 = vector.shape_cast %11 : vector<16xf32> to vector<16x1xf32>
    %cst_7 = arith.constant 3.200000e+01 : f32
    %13 = vector.broadcast %cst_7 : f32 to vector<16x1xf32>
    %14 = arith.divf %12, %13 : vector<16x1xf32>
    %15 = vector.broadcast %7 : vector<16x1xf32> to vector<16x32xf32>
    %16 = arith.subf %1, %15 : vector<16x32xf32>
    %cst_8 = arith.constant 9.99999974E-6 : f32
    %17 = vector.broadcast %cst_8 : f32 to vector<16x1xf32>
    %18 = arith.addf %14, %17 : vector<16x1xf32>
    %19 = math.rsqrt %18 : vector<16x1xf32>
    %20 = vector.broadcast %19 : vector<16x1xf32> to vector<16x32xf32>
    %21 = arith.mulf %16, %20 : vector<16x32xf32>
    %c0_9 = arith.constant 0 : index
    %c0_10 = arith.constant 0 : index
    %22 = vector.load %arg3[%c0_9, %c0_10] : memref<1x32xf32, #tpu.memory_space<vmem>>, vector<1x32xf32>
    %23 = vector.broadcast %22 : vector<1x32xf32> to vector<16x32xf32>
    %24 = arith.mulf %21, %23 : vector<16x32xf32>
    %c0_11 = arith.constant 0 : index
    %c0_12 = arith.constant 0 : index
    %25 = vector.load %arg4[%c0_11, %c0_12] : memref<1x32xf32, #tpu.memory_space<vmem>>, vector<1x32xf32>
    %26 = vector.broadcast %25 : vector<1x32xf32> to vector<16x32xf32>
    %27 = arith.addf %24, %26 : vector<16x32xf32>
    %c0_13 = arith.constant 0 : index
    %c0_14 = arith.constant 0 : index
    %28 = vector.load %arg5[%c0_13, %c0_14] : memref<32x96xf32, #tpu.memory_space<vmem>>, vector<32x96xf32>
    %cst_15 = arith.constant dense<0.000000e+00> : vector<16x96xf32>
    %29 = tpu.matmul %27, %28, %cst_15 {dimension_numbers = #tpu.dot_dimension_numbers<[1], [0], [0], [1], [0, 0, 1, 1], [], []>} : vector<16x32xf32>, vector<32x96xf32>, vector<16x96xf32> -> vector<16x96xf32>
    %30 = vector.extract_strided_slice %29 {offsets = [0, 0], sizes = [16, 32], strides = [1, 1]} : vector<16x96xf32> to vector<16x32xf32>
    %31 = vector.extract_strided_slice %29 {offsets = [0, 32], sizes = [16, 32], strides = [1, 1]} : vector<16x96xf32> to vector<16x32xf32>
    %32 = vector.extract_strided_slice %29 {offsets = [0, 64], sizes = [16, 32], strides = [1, 1]} : vector<16x96xf32> to vector<16x32xf32>
    %c0_16 = arith.constant 0 : index
    %c0_17 = arith.constant 0 : index
    %33 = vector.load %arg6[%c0_16, %c0_17] : memref<32x32xf32, #tpu.memory_space<vmem>>, vector<32x32xf32>
    %34 = vector.extract_strided_slice %30 {offsets = [0, 0], sizes = [16, 8], strides = [1, 1]} : vector<16x32xf32> to vector<16x8xf32>
    %cst_18 = arith.constant 0.353553385 : f32
    %35 = vector.broadcast %cst_18 : f32 to vector<16x8xf32>
    %36 = arith.mulf %34, %35 : vector<16x8xf32>
    %37 = vector.extract_strided_slice %31 {offsets = [0, 0], sizes = [16, 8], strides = [1, 1]} : vector<16x32xf32> to vector<16x8xf32>
    %38 = vector.extract_strided_slice %32 {offsets = [0, 0], sizes = [16, 8], strides = [1, 1]} : vector<16x32xf32> to vector<16x8xf32>
    %39 = tpu.transpose %37, [1, 0] : vector<16x8xf32> -> vector<8x16xf32>
    %cst_19 = arith.constant dense<0.000000e+00> : vector<16x16xf32>
    %40 = tpu.matmul %36, %39, %cst_19 {dimension_numbers = #tpu.dot_dimension_numbers<[1], [0], [0], [1], [0, 0, 1, 1], [], []>} : vector<16x8xf32>, vector<8x16xf32>, vector<16x16xf32> -> vector<16x16xf32>
    %cst_20 = arith.constant dense<0xFF800000> : vector<16xf32>
    %41 = vector.multi_reduction <maximumf>, %40, %cst_20 [1] : vector<16x16xf32> to vector<16xf32>
    %42 = vector.shape_cast %41 : vector<16xf32> to vector<16x1xf32>
    %43 = vector.broadcast %42 : vector<16x1xf32> to vector<16x16xf32>
    %44 = arith.subf %40, %43 : vector<16x16xf32>
    %45 = math.exp %44 : vector<16x16xf32>
    %cst_21 = arith.constant dense<0.000000e+00> : vector<16xf32>
    %46 = vector.multi_reduction <add>, %45, %cst_21 [1] : vector<16x16xf32> to vector<16xf32>
    %47 = vector.shape_cast %46 : vector<16xf32> to vector<16x1xf32>
    %48 = tpu.reciprocal %47 {approx = true} : vector<16x1xf32> -> vector<16x1xf32>
    %49 = vector.broadcast %48 : vector<16x1xf32> to vector<16x16xf32>
    %50 = arith.mulf %45, %49 : vector<16x16xf32>
    %cst_22 = arith.constant dense<0.000000e+00> : vector<16x8xf32>
    %51 = tpu.matmul %50, %38, %cst_22 {dimension_numbers = #tpu.dot_dimension_numbers<[1], [0], [0], [1], [0, 0, 1, 1], [], []>} : vector<16x16xf32>, vector<16x8xf32>, vector<16x8xf32> -> vector<16x8xf32>
    %52 = vector.extract_strided_slice %33 {offsets = [0, 0], sizes = [8, 32], strides = [1, 1]} : vector<32x32xf32> to vector<8x32xf32>
    %cst_23 = arith.constant dense<0.000000e+00> : vector<16x32xf32>
    %53 = tpu.matmul %51, %52, %cst_23 {dimension_numbers = #tpu.dot_dimension_numbers<[1], [0], [0], [1], [0, 0, 1, 1], [], []>} : vector<16x8xf32>, vector<8x32xf32>, vector<16x32xf32> -> vector<16x32xf32>
    %54 = vector.extract_strided_slice %30 {offsets = [0, 8], sizes = [16, 8], strides = [1, 1]} : vector<16x32xf32> to vector<16x8xf32>
    %cst_24 = arith.constant 0.353553385 : f32
    %55 = vector.broadcast %cst_24 : f32 to vector<16x8xf32>
    %56 = arith.mulf %54, %55 : vector<16x8xf32>
    %57 = vector.extract_strided_slice %31 {offsets = [0, 8], sizes = [16, 8], strides = [1, 1]} : vector<16x32xf32> to vector<16x8xf32>
    %58 = vector.extract_strided_slice %32 {offsets = [0, 8], sizes = [16, 8], strides = [1, 1]} : vector<16x32xf32> to vector<16x8xf32>
    %59 = tpu.transpose %57, [1, 0] : vector<16x8xf32> -> vector<8x16xf32>
    %cst_25 = arith.constant dense<0.000000e+00> : vector<16x16xf32>
    %60 = tpu.matmul %56, %59, %cst_25 {dimension_numbers = #tpu.dot_dimension_numbers<[1], [0], [0], [1], [0, 0, 1, 1], [], []>} : vector<16x8xf32>, vector<8x16xf32>, vector<16x16xf32> -> vector<16x16xf32>
    %cst_26 = arith.constant dense<0xFF800000> : vector<16xf32>
    %61 = vector.multi_reduction <maximumf>, %60, %cst_26 [1] : vector<16x16xf32> to vector<16xf32>
    %62 = vector.shape_cast %61 : vector<16xf32> to vector<16x1xf32>
    %63 = vector.broadcast %62 : vector<16x1xf32> to vector<16x16xf32>
    %64 = arith.subf %60, %63 : vector<16x16xf32>
    %65 = math.exp %64 : vector<16x16xf32>
    %cst_27 = arith.constant dense<0.000000e+00> : vector<16xf32>
    %66 = vector.multi_reduction <add>, %65, %cst_27 [1] : vector<16x16xf32> to vector<16xf32>
    %67 = vector.shape_cast %66 : vector<16xf32> to vector<16x1xf32>
    %68 = tpu.reciprocal %67 {approx = true} : vector<16x1xf32> -> vector<16x1xf32>
    %69 = vector.broadcast %68 : vector<16x1xf32> to vector<16x16xf32>
    %70 = arith.mulf %65, %69 : vector<16x16xf32>
    %cst_28 = arith.constant dense<0.000000e+00> : vector<16x8xf32>
    %71 = tpu.matmul %70, %58, %cst_28 {dimension_numbers = #tpu.dot_dimension_numbers<[1], [0], [0], [1], [0, 0, 1, 1], [], []>} : vector<16x16xf32>, vector<16x8xf32>, vector<16x8xf32> -> vector<16x8xf32>
    %72 = vector.extract_strided_slice %33 {offsets = [8, 0], sizes = [8, 32], strides = [1, 1]} : vector<32x32xf32> to vector<8x32xf32>
    %cst_29 = arith.constant dense<0.000000e+00> : vector<16x32xf32>
    %73 = tpu.matmul %71, %72, %cst_29 {dimension_numbers = #tpu.dot_dimension_numbers<[1], [0], [0], [1], [0, 0, 1, 1], [], []>} : vector<16x8xf32>, vector<8x32xf32>, vector<16x32xf32> -> vector<16x32xf32>
    %74 = arith.addf %53, %73 : vector<16x32xf32>
    %75 = vector.extract_strided_slice %30 {offsets = [0, 16], sizes = [16, 8], strides = [1, 1]} : vector<16x32xf32> to vector<16x8xf32>
    %cst_30 = arith.constant 0.353553385 : f32
    %76 = vector.broadcast %cst_30 : f32 to vector<16x8xf32>
    %77 = arith.mulf %75, %76 : vector<16x8xf32>
    %78 = vector.extract_strided_slice %31 {offsets = [0, 16], sizes = [16, 8], strides = [1, 1]} : vector<16x32xf32> to vector<16x8xf32>
    %79 = vector.extract_strided_slice %32 {offsets = [0, 16], sizes = [16, 8], strides = [1, 1]} : vector<16x32xf32> to vector<16x8xf32>
    %80 = tpu.transpose %78, [1, 0] : vector<16x8xf32> -> vector<8x16xf32>
    %cst_31 = arith.constant dense<0.000000e+00> : vector<16x16xf32>
    %81 = tpu.matmul %77, %80, %cst_31 {dimension_numbers = #tpu.dot_dimension_numbers<[1], [0], [0], [1], [0, 0, 1, 1], [], []>} : vector<16x8xf32>, vector<8x16xf32>, vector<16x16xf32> -> vector<16x16xf32>
    %cst_32 = arith.constant dense<0xFF800000> : vector<16xf32>
    %82 = vector.multi_reduction <maximumf>, %81, %cst_32 [1] : vector<16x16xf32> to vector<16xf32>
    %83 = vector.shape_cast %82 : vector<16xf32> to vector<16x1xf32>
    %84 = vector.broadcast %83 : vector<16x1xf32> to vector<16x16xf32>
    %85 = arith.subf %81, %84 : vector<16x16xf32>
    %86 = math.exp %85 : vector<16x16xf32>
    %cst_33 = arith.constant dense<0.000000e+00> : vector<16xf32>
    %87 = vector.multi_reduction <add>, %86, %cst_33 [1] : vector<16x16xf32> to vector<16xf32>
    %88 = vector.shape_cast %87 : vector<16xf32> to vector<16x1xf32>
    %89 = tpu.reciprocal %88 {approx = true} : vector<16x1xf32> -> vector<16x1xf32>
    %90 = vector.broadcast %89 : vector<16x1xf32> to vector<16x16xf32>
    %91 = arith.mulf %86, %90 : vector<16x16xf32>
    %cst_34 = arith.constant dense<0.000000e+00> : vector<16x8xf32>
    %92 = tpu.matmul %91, %79, %cst_34 {dimension_numbers = #tpu.dot_dimension_numbers<[1], [0], [0], [1], [0, 0, 1, 1], [], []>} : vector<16x16xf32>, vector<16x8xf32>, vector<16x8xf32> -> vector<16x8xf32>
    %93 = vector.extract_strided_slice %33 {offsets = [16, 0], sizes = [8, 32], strides = [1, 1]} : vector<32x32xf32> to vector<8x32xf32>
    %cst_35 = arith.constant dense<0.000000e+00> : vector<16x32xf32>
    %94 = tpu.matmul %92, %93, %cst_35 {dimension_numbers = #tpu.dot_dimension_numbers<[1], [0], [0], [1], [0, 0, 1, 1], [], []>} : vector<16x8xf32>, vector<8x32xf32>, vector<16x32xf32> -> vector<16x32xf32>
    %95 = arith.addf %74, %94 : vector<16x32xf32>
    %96 = vector.extract_strided_slice %30 {offsets = [0, 24], sizes = [16, 8], strides = [1, 1]} : vector<16x32xf32> to vector<16x8xf32>
    %cst_36 = arith.constant 0.353553385 : f32
    %97 = vector.broadcast %cst_36 : f32 to vector<16x8xf32>
    %98 = arith.mulf %96, %97 : vector<16x8xf32>
    %99 = vector.extract_strided_slice %31 {offsets = [0, 24], sizes = [16, 8], strides = [1, 1]} : vector<16x32xf32> to vector<16x8xf32>
    %100 = vector.extract_strided_slice %32 {offsets = [0, 24], sizes = [16, 8], strides = [1, 1]} : vector<16x32xf32> to vector<16x8xf32>
    %101 = tpu.transpose %99, [1, 0] : vector<16x8xf32> -> vector<8x16xf32>
    %cst_37 = arith.constant dense<0.000000e+00> : vector<16x16xf32>
    %102 = tpu.matmul %98, %101, %cst_37 {dimension_numbers = #tpu.dot_dimension_numbers<[1], [0], [0], [1], [0, 0, 1, 1], [], []>} : vector<16x8xf32>, vector<8x16xf32>, vector<16x16xf32> -> vector<16x16xf32>
    %cst_38 = arith.constant dense<0xFF800000> : vector<16xf32>
    %103 = vector.multi_reduction <maximumf>, %102, %cst_38 [1] : vector<16x16xf32> to vector<16xf32>
    %104 = vector.shape_cast %103 : vector<16xf32> to vector<16x1xf32>
    %105 = vector.broadcast %104 : vector<16x1xf32> to vector<16x16xf32>
    %106 = arith.subf %102, %105 : vector<16x16xf32>
    %107 = math.exp %106 : vector<16x16xf32>
    %cst_39 = arith.constant dense<0.000000e+00> : vector<16xf32>
    %108 = vector.multi_reduction <add>, %107, %cst_39 [1] : vector<16x16xf32> to vector<16xf32>
    %109 = vector.shape_cast %108 : vector<16xf32> to vector<16x1xf32>
    %110 = tpu.reciprocal %109 {approx = true} : vector<16x1xf32> -> vector<16x1xf32>
    %111 = vector.broadcast %110 : vector<16x1xf32> to vector<16x16xf32>
    %112 = arith.mulf %107, %111 : vector<16x16xf32>
    %cst_40 = arith.constant dense<0.000000e+00> : vector<16x8xf32>
    %113 = tpu.matmul %112, %100, %cst_40 {dimension_numbers = #tpu.dot_dimension_numbers<[1], [0], [0], [1], [0, 0, 1, 1], [], []>} : vector<16x16xf32>, vector<16x8xf32>, vector<16x8xf32> -> vector<16x8xf32>
    %114 = vector.extract_strided_slice %33 {offsets = [24, 0], sizes = [8, 32], strides = [1, 1]} : vector<32x32xf32> to vector<8x32xf32>
    %cst_41 = arith.constant dense<0.000000e+00> : vector<16x32xf32>
    %115 = tpu.matmul %113, %114, %cst_41 {dimension_numbers = #tpu.dot_dimension_numbers<[1], [0], [0], [1], [0, 0, 1, 1], [], []>} : vector<16x8xf32>, vector<8x32xf32>, vector<16x32xf32> -> vector<16x32xf32>
    %116 = arith.addf %95, %115 : vector<16x32xf32>
    %c0_42 = arith.constant 0 : index
    %c0_43 = arith.constant 0 : index
    %117 = vector.load %arg7[%c0_42, %c0_43] : memref<1x32xf32, #tpu.memory_space<vmem>>, vector<1x32xf32>
    %118 = vector.broadcast %117 : vector<1x32xf32> to vector<16x32xf32>
    %119 = arith.addf %116, %118 : vector<16x32xf32>
    %120 = arith.addf %1, %119 : vector<16x32xf32>
    %cst_44 = arith.constant dense<0.000000e+00> : vector<16xf32>
    %121 = vector.multi_reduction <add>, %120, %cst_44 [1] : vector<16x32xf32> to vector<16xf32>
    %122 = vector.shape_cast %121 : vector<16xf32> to vector<16x1xf32>
    %cst_45 = arith.constant 3.200000e+01 : f32
    %123 = vector.broadcast %cst_45 : f32 to vector<16x1xf32>
    %124 = arith.divf %122, %123 : vector<16x1xf32>
    %125 = vector.broadcast %124 : vector<16x1xf32> to vector<16x32xf32>
    %126 = arith.subf %120, %125 : vector<16x32xf32>
    %127 = arith.mulf %126, %126 : vector<16x32xf32>
    %cst_46 = arith.constant dense<0.000000e+00> : vector<16xf32>
    %128 = vector.multi_reduction <add>, %127, %cst_46 [1] : vector<16x32xf32> to vector<16xf32>
    %129 = vector.shape_cast %128 : vector<16xf32> to vector<16x1xf32>
    %cst_47 = arith.constant 3.200000e+01 : f32
    %130 = vector.broadcast %cst_47 : f32 to vector<16x1xf32>
    %131 = arith.divf %129, %130 : vector<16x1xf32>
    %132 = vector.broadcast %124 : vector<16x1xf32> to vector<16x32xf32>
    %133 = arith.subf %120, %132 : vector<16x32xf32>
    %cst_48 = arith.constant 9.99999974E-6 : f32
    %134 = vector.broadcast %cst_48 : f32 to vector<16x1xf32>
    %135 = arith.addf %131, %134 : vector<16x1xf32>
    %136 = math.rsqrt %135 : vector<16x1xf32>
    %137 = vector.broadcast %136 : vector<16x1xf32> to vector<16x32xf32>
    %138 = arith.mulf %133, %137 : vector<16x32xf32>
    %c0_49 = arith.constant 0 : index
    %c0_50 = arith.constant 0 : index
    %139 = vector.load %arg8[%c0_49, %c0_50] : memref<1x32xf32, #tpu.memory_space<vmem>>, vector<1x32xf32>
    %140 = vector.broadcast %139 : vector<1x32xf32> to vector<16x32xf32>
    %141 = arith.mulf %138, %140 : vector<16x32xf32>
    %c0_51 = arith.constant 0 : index
    %c0_52 = arith.constant 0 : index
    %142 = vector.load %arg9[%c0_51, %c0_52] : memref<1x32xf32, #tpu.memory_space<vmem>>, vector<1x32xf32>
    %143 = vector.broadcast %142 : vector<1x32xf32> to vector<16x32xf32>
    %144 = arith.addf %141, %143 : vector<16x32xf32>
    %c0_53 = arith.constant 0 : index
    %c0_54 = arith.constant 0 : index
    %145 = vector.load %arg10[%c0_53, %c0_54] : memref<32x32xf32, #tpu.memory_space<vmem>>, vector<32x32xf32>
    %cst_55 = arith.constant dense<0.000000e+00> : vector<16x32xf32>
    %146 = tpu.matmul %144, %145, %cst_55 {dimension_numbers = #tpu.dot_dimension_numbers<[1], [0], [0], [1], [0, 0, 1, 1], [], []>} : vector<16x32xf32>, vector<32x32xf32>, vector<16x32xf32> -> vector<16x32xf32>
    %c0_56 = arith.constant 0 : index
    %c0_57 = arith.constant 0 : index
    %147 = vector.load %arg11[%c0_56, %c0_57] : memref<24x64xf32, #tpu.memory_space<vmem>>, vector<24x64xf32>
    %cst_58 = arith.constant dense<0.000000e+00> : vector<8x64xf32>
    %148 = tpu.matmul %3, %147, %cst_58 {dimension_numbers = #tpu.dot_dimension_numbers<[1], [0], [0], [1], [0, 0, 1, 1], [], []>} : vector<8x24xf32>, vector<24x64xf32>, vector<8x64xf32> -> vector<8x64xf32>
    %149 = vector.extract_strided_slice %148 {offsets = [0, 0], sizes = [8, 32], strides = [1, 1]} : vector<8x64xf32> to vector<8x32xf32>
    %150 = vector.extract_strided_slice %148 {offsets = [0, 32], sizes = [8, 32], strides = [1, 1]} : vector<8x64xf32> to vector<8x32xf32>
    %c0_59 = arith.constant 0 : index
    %c0_60 = arith.constant 0 : index
    %151 = vector.load %arg12[%c0_59, %c0_60] : memref<32x32xf32, #tpu.memory_space<vmem>>, vector<32x32xf32>
    %152 = vector.extract_strided_slice %146 {offsets = [0, 0], sizes = [16, 8], strides = [1, 1]} : vector<16x32xf32> to vector<16x8xf32>
    %cst_61 = arith.constant 0.353553385 : f32
    %153 = vector.broadcast %cst_61 : f32 to vector<16x8xf32>
    %154 = arith.mulf %152, %153 : vector<16x8xf32>
    %155 = vector.extract_strided_slice %149 {offsets = [0, 0], sizes = [8, 8], strides = [1, 1]} : vector<8x32xf32> to vector<8x8xf32>
    %156 = vector.extract_strided_slice %150 {offsets = [0, 0], sizes = [8, 8], strides = [1, 1]} : vector<8x32xf32> to vector<8x8xf32>
    %157 = tpu.transpose %155, [1, 0] : vector<8x8xf32> -> vector<8x8xf32>
    %cst_62 = arith.constant dense<0.000000e+00> : vector<16x8xf32>
    %158 = tpu.matmul %154, %157, %cst_62 {dimension_numbers = #tpu.dot_dimension_numbers<[1], [0], [0], [1], [0, 0, 1, 1], [], []>} : vector<16x8xf32>, vector<8x8xf32>, vector<16x8xf32> -> vector<16x8xf32>
    %cst_63 = arith.constant dense<0xFF800000> : vector<16xf32>
    %159 = vector.multi_reduction <maximumf>, %158, %cst_63 [1] : vector<16x8xf32> to vector<16xf32>
    %160 = vector.shape_cast %159 : vector<16xf32> to vector<16x1xf32>
    %161 = vector.broadcast %160 : vector<16x1xf32> to vector<16x8xf32>
    %162 = arith.subf %158, %161 : vector<16x8xf32>
    %163 = math.exp %162 : vector<16x8xf32>
    %cst_64 = arith.constant dense<0.000000e+00> : vector<16xf32>
    %164 = vector.multi_reduction <add>, %163, %cst_64 [1] : vector<16x8xf32> to vector<16xf32>
    %165 = vector.shape_cast %164 : vector<16xf32> to vector<16x1xf32>
    %166 = tpu.reciprocal %165 {approx = true} : vector<16x1xf32> -> vector<16x1xf32>
    %167 = vector.broadcast %166 : vector<16x1xf32> to vector<16x8xf32>
    %168 = arith.mulf %163, %167 : vector<16x8xf32>
    %cst_65 = arith.constant dense<0.000000e+00> : vector<16x8xf32>
    %169 = tpu.matmul %168, %156, %cst_65 {dimension_numbers = #tpu.dot_dimension_numbers<[1], [0], [0], [1], [0, 0, 1, 1], [], []>} : vector<16x8xf32>, vector<8x8xf32>, vector<16x8xf32> -> vector<16x8xf32>
    %170 = vector.extract_strided_slice %151 {offsets = [0, 0], sizes = [8, 32], strides = [1, 1]} : vector<32x32xf32> to vector<8x32xf32>
    %cst_66 = arith.constant dense<0.000000e+00> : vector<16x32xf32>
    %171 = tpu.matmul %169, %170, %cst_66 {dimension_numbers = #tpu.dot_dimension_numbers<[1], [0], [0], [1], [0, 0, 1, 1], [], []>} : vector<16x8xf32>, vector<8x32xf32>, vector<16x32xf32> -> vector<16x32xf32>
    %172 = vector.extract_strided_slice %146 {offsets = [0, 8], sizes = [16, 8], strides = [1, 1]} : vector<16x32xf32> to vector<16x8xf32>
    %cst_67 = arith.constant 0.353553385 : f32
    %173 = vector.broadcast %cst_67 : f32 to vector<16x8xf32>
    %174 = arith.mulf %172, %173 : vector<16x8xf32>
    %175 = vector.extract_strided_slice %149 {offsets = [0, 8], sizes = [8, 8], strides = [1, 1]} : vector<8x32xf32> to vector<8x8xf32>
    %176 = vector.extract_strided_slice %150 {offsets = [0, 8], sizes = [8, 8], strides = [1, 1]} : vector<8x32xf32> to vector<8x8xf32>
    %177 = tpu.transpose %175, [1, 0] : vector<8x8xf32> -> vector<8x8xf32>
    %cst_68 = arith.constant dense<0.000000e+00> : vector<16x8xf32>
    %178 = tpu.matmul %174, %177, %cst_68 {dimension_numbers = #tpu.dot_dimension_numbers<[1], [0], [0], [1], [0, 0, 1, 1], [], []>} : vector<16x8xf32>, vector<8x8xf32>, vector<16x8xf32> -> vector<16x8xf32>
    %cst_69 = arith.constant dense<0xFF800000> : vector<16xf32>
    %179 = vector.multi_reduction <maximumf>, %178, %cst_69 [1] : vector<16x8xf32> to vector<16xf32>
    %180 = vector.shape_cast %179 : vector<16xf32> to vector<16x1xf32>
    %181 = vector.broadcast %180 : vector<16x1xf32> to vector<16x8xf32>
    %182 = arith.subf %178, %181 : vector<16x8xf32>
    %183 = math.exp %182 : vector<16x8xf32>
    %cst_70 = arith.constant dense<0.000000e+00> : vector<16xf32>
    %184 = vector.multi_reduction <add>, %183, %cst_70 [1] : vector<16x8xf32> to vector<16xf32>
    %185 = vector.shape_cast %184 : vector<16xf32> to vector<16x1xf32>
    %186 = tpu.reciprocal %185 {approx = true} : vector<16x1xf32> -> vector<16x1xf32>
    %187 = vector.broadcast %186 : vector<16x1xf32> to vector<16x8xf32>
    %188 = arith.mulf %183, %187 : vector<16x8xf32>
    %cst_71 = arith.constant dense<0.000000e+00> : vector<16x8xf32>
    %189 = tpu.matmul %188, %176, %cst_71 {dimension_numbers = #tpu.dot_dimension_numbers<[1], [0], [0], [1], [0, 0, 1, 1], [], []>} : vector<16x8xf32>, vector<8x8xf32>, vector<16x8xf32> -> vector<16x8xf32>
    %190 = vector.extract_strided_slice %151 {offsets = [8, 0], sizes = [8, 32], strides = [1, 1]} : vector<32x32xf32> to vector<8x32xf32>
    %cst_72 = arith.constant dense<0.000000e+00> : vector<16x32xf32>
    %191 = tpu.matmul %189, %190, %cst_72 {dimension_numbers = #tpu.dot_dimension_numbers<[1], [0], [0], [1], [0, 0, 1, 1], [], []>} : vector<16x8xf32>, vector<8x32xf32>, vector<16x32xf32> -> vector<16x32xf32>
    %192 = arith.addf %171, %191 : vector<16x32xf32>
    %193 = vector.extract_strided_slice %146 {offsets = [0, 16], sizes = [16, 8], strides = [1, 1]} : vector<16x32xf32> to vector<16x8xf32>
    %cst_73 = arith.constant 0.353553385 : f32
    %194 = vector.broadcast %cst_73 : f32 to vector<16x8xf32>
    %195 = arith.mulf %193, %194 : vector<16x8xf32>
    %196 = vector.extract_strided_slice %149 {offsets = [0, 16], sizes = [8, 8], strides = [1, 1]} : vector<8x32xf32> to vector<8x8xf32>
    %197 = vector.extract_strided_slice %150 {offsets = [0, 16], sizes = [8, 8], strides = [1, 1]} : vector<8x32xf32> to vector<8x8xf32>
    %198 = tpu.transpose %196, [1, 0] : vector<8x8xf32> -> vector<8x8xf32>
    %cst_74 = arith.constant dense<0.000000e+00> : vector<16x8xf32>
    %199 = tpu.matmul %195, %198, %cst_74 {dimension_numbers = #tpu.dot_dimension_numbers<[1], [0], [0], [1], [0, 0, 1, 1], [], []>} : vector<16x8xf32>, vector<8x8xf32>, vector<16x8xf32> -> vector<16x8xf32>
    %cst_75 = arith.constant dense<0xFF800000> : vector<16xf32>
    %200 = vector.multi_reduction <maximumf>, %199, %cst_75 [1] : vector<16x8xf32> to vector<16xf32>
    %201 = vector.shape_cast %200 : vector<16xf32> to vector<16x1xf32>
    %202 = vector.broadcast %201 : vector<16x1xf32> to vector<16x8xf32>
    %203 = arith.subf %199, %202 : vector<16x8xf32>
    %204 = math.exp %203 : vector<16x8xf32>
    %cst_76 = arith.constant dense<0.000000e+00> : vector<16xf32>
    %205 = vector.multi_reduction <add>, %204, %cst_76 [1] : vector<16x8xf32> to vector<16xf32>
    %206 = vector.shape_cast %205 : vector<16xf32> to vector<16x1xf32>
    %207 = tpu.reciprocal %206 {approx = true} : vector<16x1xf32> -> vector<16x1xf32>
    %208 = vector.broadcast %207 : vector<16x1xf32> to vector<16x8xf32>
    %209 = arith.mulf %204, %208 : vector<16x8xf32>
    %cst_77 = arith.constant dense<0.000000e+00> : vector<16x8xf32>
    %210 = tpu.matmul %209, %197, %cst_77 {dimension_numbers = #tpu.dot_dimension_numbers<[1], [0], [0], [1], [0, 0, 1, 1], [], []>} : vector<16x8xf32>, vector<8x8xf32>, vector<16x8xf32> -> vector<16x8xf32>
    %211 = vector.extract_strided_slice %151 {offsets = [16, 0], sizes = [8, 32], strides = [1, 1]} : vector<32x32xf32> to vector<8x32xf32>
    %cst_78 = arith.constant dense<0.000000e+00> : vector<16x32xf32>
    %212 = tpu.matmul %210, %211, %cst_78 {dimension_numbers = #tpu.dot_dimension_numbers<[1], [0], [0], [1], [0, 0, 1, 1], [], []>} : vector<16x8xf32>, vector<8x32xf32>, vector<16x32xf32> -> vector<16x32xf32>
    %213 = arith.addf %192, %212 : vector<16x32xf32>
    %214 = vector.extract_strided_slice %146 {offsets = [0, 24], sizes = [16, 8], strides = [1, 1]} : vector<16x32xf32> to vector<16x8xf32>
    %cst_79 = arith.constant 0.353553385 : f32
    %215 = vector.broadcast %cst_79 : f32 to vector<16x8xf32>
    %216 = arith.mulf %214, %215 : vector<16x8xf32>
    %217 = vector.extract_strided_slice %149 {offsets = [0, 24], sizes = [8, 8], strides = [1, 1]} : vector<8x32xf32> to vector<8x8xf32>
    %218 = vector.extract_strided_slice %150 {offsets = [0, 24], sizes = [8, 8], strides = [1, 1]} : vector<8x32xf32> to vector<8x8xf32>
    %219 = tpu.transpose %217, [1, 0] : vector<8x8xf32> -> vector<8x8xf32>
    %cst_80 = arith.constant dense<0.000000e+00> : vector<16x8xf32>
    %220 = tpu.matmul %216, %219, %cst_80 {dimension_numbers = #tpu.dot_dimension_numbers<[1], [0], [0], [1], [0, 0, 1, 1], [], []>} : vector<16x8xf32>, vector<8x8xf32>, vector<16x8xf32> -> vector<16x8xf32>
    %cst_81 = arith.constant dense<0xFF800000> : vector<16xf32>
    %221 = vector.multi_reduction <maximumf>, %220, %cst_81 [1] : vector<16x8xf32> to vector<16xf32>
    %222 = vector.shape_cast %221 : vector<16xf32> to vector<16x1xf32>
    %223 = vector.broadcast %222 : vector<16x1xf32> to vector<16x8xf32>
    %224 = arith.subf %220, %223 : vector<16x8xf32>
    %225 = math.exp %224 : vector<16x8xf32>
    %cst_82 = arith.constant dense<0.000000e+00> : vector<16xf32>
    %226 = vector.multi_reduction <add>, %225, %cst_82 [1] : vector<16x8xf32> to vector<16xf32>
    %227 = vector.shape_cast %226 : vector<16xf32> to vector<16x1xf32>
    %228 = tpu.reciprocal %227 {approx = true} : vector<16x1xf32> -> vector<16x1xf32>
    %229 = vector.broadcast %228 : vector<16x1xf32> to vector<16x8xf32>
    %230 = arith.mulf %225, %229 : vector<16x8xf32>
    %cst_83 = arith.constant dense<0.000000e+00> : vector<16x8xf32>
    %231 = tpu.matmul %230, %218, %cst_83 {dimension_numbers = #tpu.dot_dimension_numbers<[1], [0], [0], [1], [0, 0, 1, 1], [], []>} : vector<16x8xf32>, vector<8x8xf32>, vector<16x8xf32> -> vector<16x8xf32>
    %232 = vector.extract_strided_slice %151 {offsets = [24, 0], sizes = [8, 32], strides = [1, 1]} : vector<32x32xf32> to vector<8x32xf32>
    %cst_84 = arith.constant dense<0.000000e+00> : vector<16x32xf32>
    %233 = tpu.matmul %231, %232, %cst_84 {dimension_numbers = #tpu.dot_dimension_numbers<[1], [0], [0], [1], [0, 0, 1, 1], [], []>} : vector<16x8xf32>, vector<8x32xf32>, vector<16x32xf32> -> vector<16x32xf32>
    %234 = arith.addf %213, %233 : vector<16x32xf32>
    %c0_85 = arith.constant 0 : index
    %c0_86 = arith.constant 0 : index
    %235 = vector.load %arg13[%c0_85, %c0_86] : memref<1x32xf32, #tpu.memory_space<vmem>>, vector<1x32xf32>
    %236 = vector.broadcast %235 : vector<1x32xf32> to vector<16x32xf32>
    %237 = arith.addf %234, %236 : vector<16x32xf32>
    %238 = arith.addf %120, %237 : vector<16x32xf32>
    %cst_87 = arith.constant dense<0.000000e+00> : vector<16xf32>
    %239 = vector.multi_reduction <add>, %238, %cst_87 [1] : vector<16x32xf32> to vector<16xf32>
    %240 = vector.shape_cast %239 : vector<16xf32> to vector<16x1xf32>
    %cst_88 = arith.constant 3.200000e+01 : f32
    %241 = vector.broadcast %cst_88 : f32 to vector<16x1xf32>
    %242 = arith.divf %240, %241 : vector<16x1xf32>
    %243 = vector.broadcast %242 : vector<16x1xf32> to vector<16x32xf32>
    %244 = arith.subf %238, %243 : vector<16x32xf32>
    %245 = arith.mulf %244, %244 : vector<16x32xf32>
    %cst_89 = arith.constant dense<0.000000e+00> : vector<16xf32>
    %246 = vector.multi_reduction <add>, %245, %cst_89 [1] : vector<16x32xf32> to vector<16xf32>
    %247 = vector.shape_cast %246 : vector<16xf32> to vector<16x1xf32>
    %cst_90 = arith.constant 3.200000e+01 : f32
    %248 = vector.broadcast %cst_90 : f32 to vector<16x1xf32>
    %249 = arith.divf %247, %248 : vector<16x1xf32>
    %250 = vector.broadcast %242 : vector<16x1xf32> to vector<16x32xf32>
    %251 = arith.subf %238, %250 : vector<16x32xf32>
    %cst_91 = arith.constant 9.99999974E-6 : f32
    %252 = vector.broadcast %cst_91 : f32 to vector<16x1xf32>
    %253 = arith.addf %249, %252 : vector<16x1xf32>
    %254 = math.rsqrt %253 : vector<16x1xf32>
    %255 = vector.broadcast %254 : vector<16x1xf32> to vector<16x32xf32>
    %256 = arith.mulf %251, %255 : vector<16x32xf32>
    %c0_92 = arith.constant 0 : index
    %c0_93 = arith.constant 0 : index
    %257 = vector.load %arg14[%c0_92, %c0_93] : memref<1x32xf32, #tpu.memory_space<vmem>>, vector<1x32xf32>
    %258 = vector.broadcast %257 : vector<1x32xf32> to vector<16x32xf32>
    %259 = arith.mulf %256, %258 : vector<16x32xf32>
    %c0_94 = arith.constant 0 : index
    %c0_95 = arith.constant 0 : index
    %260 = vector.load %arg15[%c0_94, %c0_95] : memref<1x32xf32, #tpu.memory_space<vmem>>, vector<1x32xf32>
    %261 = vector.broadcast %260 : vector<1x32xf32> to vector<16x32xf32>
    %262 = arith.addf %259, %261 : vector<16x32xf32>
    %c0_96 = arith.constant 0 : index
    %c0_97 = arith.constant 0 : index
    %263 = vector.load %arg16[%c0_96, %c0_97] : memref<32x256xf32, #tpu.memory_space<vmem>>, vector<32x256xf32>
    %cst_98 = arith.constant dense<0.000000e+00> : vector<16x256xf32>
    %264 = tpu.matmul %262, %263, %cst_98 {dimension_numbers = #tpu.dot_dimension_numbers<[1], [0], [0], [1], [0, 0, 1, 1], [], []>} : vector<16x32xf32>, vector<32x256xf32>, vector<16x256xf32> -> vector<16x256xf32>
    %c0_99 = arith.constant 0 : index
    %c0_100 = arith.constant 0 : index
    %265 = vector.load %arg17[%c0_99, %c0_100] : memref<1x256xf32, #tpu.memory_space<vmem>>, vector<1x256xf32>
    %266 = vector.broadcast %265 : vector<1x256xf32> to vector<16x256xf32>
    %267 = arith.addf %264, %266 : vector<16x256xf32>
    %268 = vector.extract_strided_slice %267 {offsets = [0, 0], sizes = [16, 128], strides = [1, 1]} : vector<16x256xf32> to vector<16x128xf32>
    %269 = vector.extract_strided_slice %267 {offsets = [0, 128], sizes = [16, 128], strides = [1, 1]} : vector<16x256xf32> to vector<16x128xf32>
    %cst_101 = arith.constant 5.000000e-01 : f32
    %270 = vector.broadcast %cst_101 : f32 to vector<16x128xf32>
    %271 = arith.mulf %270, %269 : vector<16x128xf32>
    %cst_102 = arith.constant 0.707106769 : f32
    %272 = vector.broadcast %cst_102 : f32 to vector<16x128xf32>
    %273 = arith.mulf %269, %272 : vector<16x128xf32>
    %274 = math.erf %273 : vector<16x128xf32>
    %cst_103 = arith.constant 1.000000e+00 : f32
    %275 = vector.broadcast %cst_103 : f32 to vector<16x128xf32>
    %276 = arith.addf %275, %274 : vector<16x128xf32>
    %277 = arith.mulf %271, %276 : vector<16x128xf32>
    %278 = arith.mulf %268, %277 : vector<16x128xf32>
    %c0_104 = arith.constant 0 : index
    %c0_105 = arith.constant 0 : index
    %279 = vector.load %arg18[%c0_104, %c0_105] : memref<128x32xf32, #tpu.memory_space<vmem>>, vector<128x32xf32>
    %cst_106 = arith.constant dense<0.000000e+00> : vector<16x32xf32>
    %280 = tpu.matmul %278, %279, %cst_106 {dimension_numbers = #tpu.dot_dimension_numbers<[1], [0], [0], [1], [0, 0, 1, 1], [], []>} : vector<16x128xf32>, vector<128x32xf32>, vector<16x32xf32> -> vector<16x32xf32>
    %c0_107 = arith.constant 0 : index
    %c0_108 = arith.constant 0 : index
    %281 = vector.load %arg19[%c0_107, %c0_108] : memref<1x32xf32, #tpu.memory_space<vmem>>, vector<1x32xf32>
    %282 = vector.broadcast %281 : vector<1x32xf32> to vector<16x32xf32>
    %283 = arith.addf %280, %282 : vector<16x32xf32>
    %284 = arith.addf %238, %283 : vector<16x32xf32>
    %c0_109 = arith.constant 0 : index
    %c0_110 = arith.constant 0 : index
    %c0_111 = arith.constant 0 : index
    %285 = vector.load %arg20[%c0_109, %c0_110, %c0_111] : memref<1x16x32xf32, #tpu.memory_space<vmem>>, vector<1x16x32xf32>
    %286 = vector.shape_cast %285 : vector<1x16x32xf32> to vector<16x32xf32>
    %287 = vector.shape_cast %284 : vector<16x32xf32> to vector<1x16x32xf32>
    tpu.vector_store %arg20[%c0_109, %c0_110, %c0_111], %287 {strides = array<i32>} : memref<1x16x32xf32, #tpu.memory_space<vmem>>, vector<1x16x32xf32>,
    return
  }
  func.func @transform_0(%arg0: i32) -> (i32, i32, i32) {
    %c0_i32 = arith.constant 0 : i32
    %c0_i32_0 = arith.constant 0 : i32
    %c0_i32_1 = arith.constant 0 : i32
    return %arg0, %c0_i32, %c0_i32_0 : i32, i32, i32
  }
  func.func @transform_1(%arg0: i32) -> (i32, i32, i32) {
    %c0_i32 = arith.constant 0 : i32
    %c0_i32_0 = arith.constant 0 : i32
    %c0_i32_1 = arith.constant 0 : i32
    return %arg0, %c0_i32, %c0_i32_0 : i32, i32, i32
  }
  func.func @transform_2(%arg0: i32) -> (i32, i32) {
    %c0_i32 = arith.constant 0 : i32
    %c0_i32_0 = arith.constant 0 : i32
    %c0_i32_1 = arith.constant 0 : i32
    return %c0_i32, %c0_i32_0 : i32, i32
  }
  func.func @transform_3(%arg0: i32) -> (i32, i32) {
    %c0_i32 = arith.constant 0 : i32
    %c0_i32_0 = arith.constant 0 : i32
    %c0_i32_1 = arith.constant 0 : i32
    return %c0_i32, %c0_i32_0 : i32, i32
  }
  func.func @transform_4(%arg0: i32) -> (i32, i32) {
    %c0_i32 = arith.constant 0 : i32
    %c0_i32_0 = arith.constant 0 : i32
    %c0_i32_1 = arith.constant 0 : i32
    return %c0_i32, %c0_i32_0 : i32, i32
  }
  func.func @transform_5(%arg0: i32) -> (i32, i32) {
    %c0_i32 = arith.constant 0 : i32
    %c0_i32_0 = arith.constant 0 : i32
    %c0_i32_1 = arith.constant 0 : i32
    return %c0_i32, %c0_i32_0 : i32, i32
  }
  func.func @transform_6(%arg0: i32) -> (i32, i32) {
    %c0_i32 = arith.constant 0 : i32
    %c0_i32_0 = arith.constant 0 : i32
    %c0_i32_1 = arith.constant 0 : i32
    return %c0_i32, %c0_i32_0 : i32, i32
  }
  func.func @transform_7(%arg0: i32) -> (i32, i32) {
    %c0_i32 = arith.constant 0 : i32
    %c0_i32_0 = arith.constant 0 : i32
    %c0_i32_1 = arith.constant 0 : i32
    return %c0_i32, %c0_i32_0 : i32, i32
  }
  func.func @transform_8(%arg0: i32) -> (i32, i32) {
    %c0_i32 = arith.constant 0 : i32
    %c0_i32_0 = arith.constant 0 : i32
    %c0_i32_1 = arith.constant 0 : i32
    return %c0_i32, %c0_i32_0 : i32, i32
  }
  func.func @transform_9(%arg0: i32) -> (i32, i32) {
    %c0_i32 = arith.constant 0 : i32
    %c0_i32_0 = arith.constant 0 : i32
    %c0_i32_1 = arith.constant 0 : i32
    return %c0_i32, %c0_i32_0 : i32, i32
  }
  func.func @transform_10(%arg0: i32) -> (i32, i32) {
    %c0_i32 = arith.constant 0 : i32
    %c0_i32_0 = arith.constant 0 : i32
    %c0_i32_1 = arith.constant 0 : i32
    return %c0_i32, %c0_i32_0 : i32, i32
  }
  func.func @transform_11(%arg0: i32) -> (i32, i32) {
    %c0_i32 = arith.constant 0 : i32
    %c0_i32_0 = arith.constant 0 : i32
    %c0_i32_1 = arith.constant 0 : i32
    return %c0_i32, %c0_i32_0 : i32, i32
  }
  func.func @transform_12(%arg0: i32) -> (i32, i32) {
    %c0_i32 = arith.constant 0 : i32
    %c0_i32_0 = arith.constant 0 : i32
    %c0_i32_1 = arith.constant 0 : i32
    return %c0_i32, %c0_i32_0 : i32, i32
  }
  func.func @transform_13(%arg0: i32) -> (i32, i32) {
    %c0_i32 = arith.constant 0 : i32
    %c0_i32_0 = arith.constant 0 : i32
    %c0_i32_1 = arith.constant 0 : i32
    return %c0_i32, %c0_i32_0 : i32, i32
  }
  func.func @transform_14(%arg0: i32) -> (i32, i32) {
    %c0_i32 = arith.constant 0 : i32
    %c0_i32_0 = arith.constant 0 : i32
    %c0_i32_1 = arith.constant 0 : i32
    return %c0_i32, %c0_i32_0 : i32, i32
  }
  func.func @transform_15(%arg0: i32) -> (i32, i32) {
    %c0_i32 = arith.constant 0 : i32
    %c0_i32_0 = arith.constant 0 : i32
    %c0_i32_1 = arith.constant 0 : i32
    return %c0_i32, %c0_i32_0 : i32, i32
  }
  func.func @transform_16(%arg0: i32) -> (i32, i32) {
    %c0_i32 = arith.constant 0 : i32
    %c0_i32_0 = arith.constant 0 : i32
    %c0_i32_1 = arith.constant 0 : i32
    return %c0_i32, %c0_i32_0 : i32, i32
  }
  func.func @transform_17(%arg0: i32) -> (i32, i32) {
    %c0_i32 = arith.constant 0 : i32
    %c0_i32_0 = arith.constant 0 : i32
    %c0_i32_1 = arith.constant 0 : i32
    return %c0_i32, %c0_i32_0 : i32, i32
  }
  func.func @transform_18(%arg0: i32) -> (i32, i32) {
    %c0_i32 = arith.constant 0 : i32
    %c0_i32_0 = arith.constant 0 : i32
    %c0_i32_1 = arith.constant 0 : i32
    return %c0_i32, %c0_i32_0 : i32, i32
  }
  func.func @transform_19(%arg0: i32) -> (i32, i32, i32) {
    %c0_i32 = arith.constant 0 : i32
    %c0_i32_0 = arith.constant 0 : i32
    %c0_i32_1 = arith.constant 0 : i32
    return %arg0, %c0_i32, %c0_i32_0 : i32, i32, i32
  }
}

</mosaic_0001>

<bundles_post_ra>
// kernel: tpu_custom_call.1
= control target key start
LH: loop header
LB: loop body
LE: loop exit
PB: predicated region body
PF: predicated region fallthrough
CT: control target
= control target key end

     0   :  { %s5145_s0 = inlined_call_operand.vmem [shape: f32[2,16,32], index: 0, kind: input, shape index: {}]   ;;  %s5146_s1 = inlined_call_operand.hbm [shape: f32[2,8,24], index: 1, kind: input, shape index: {}]   ;;  %s5147_s2 = inlined_call_operand.vmem [shape: f32[1,32], index: 2, kind: input, shape index: {}]   ;;  %s5148_s3 = inlined_call_operand.vmem [shape: f32[1,32], index: 3, kind: input, shape index: {}]   ;;  %s5149_s4 = inlined_call_operand.vmem [shape: f32[32,96], index: 4, kind: input, shape index: {}]   ;;  %s5150_s5 = inlined_call_operand.vmem [shape: f32[32,32], index: 5, kind: input, shape index: {}]   ;;  %s5151_s6 = inlined_call_operand.vmem [shape: f32[1,32], index: 6, kind: input, shape index: {}]   ;;  %s5152_s7 = inlined_call_operand.vmem [shape: f32[1,32], index: 7, kind: input, shape index: {}]   ;;  %s5153_s8 = inlined_call_operand.vmem [shape: f32[1,32], index: 8, kind: input, shape index: {}]   ;;  %s5154_s9 = inlined_call_operand.hbm [shape: f32[32,32], index: 9, kind: input, shape index: {}]   ;;  %s5155_s10 = inlined_call_operand.hbm [shape: f32[24,64], index: 10, kind: input, shape index: {}]   ;;  %s5156_s11 = inlined_call_operand.hbm [shape: f32[32,32], index: 11, kind: input, shape index: {}]   ;;  %s5157_s12 = inlined_call_operand.vmem [shape: f32[1,32], index: 12, kind: input, shape index: {}]   ;;  %s5158_s13 = inlined_call_operand.vmem [shape: f32[1,32], index: 13, kind: input, shape index: {}]   ;;  %s5159_s14 = inlined_call_operand.vmem [shape: f32[1,32], index: 14, kind: input, shape index: {}]   ;;  %s5160_s15 = inlined_call_operand.vmem [shape: f32[32,256], index: 15, kind: input, shape index: {}]   ;;  %s5161_s16 = inlined_call_operand.vmem [shape: f32[1,256], index: 16, kind: input, shape index: {}]   ;;  %s5162_s17 = inlined_call_operand.vmem [shape: f32[128,32], index: 17, kind: input, shape index: {}]   ;;  %s5163_s18 = inlined_call_operand.vmem [shape: f32[1,32], index: 18, kind: input, shape index: {}]   ;;  %s5164_s19 = inlined_call_operand.hbm [shape: f32[2,16,32], index: 19, kind: output, shape index: {}]  }
   0x1   :  { %5177 = sst [smem:[#allocation21_spill]] %s5145_s0 }
   0x2   :  { %5178 = sst [smem:[#allocation22_spill]] %s5146_s1 }
   0x3   :  { %5179 = sst [smem:[#allocation23_spill]] %s5147_s2 }
   0x4   :  { %5180 = sst [smem:[#allocation24_spill]] %s5148_s3 }
   0x5   :  { %5181 = sst [smem:[#allocation25_spill]] %s5154_s9 }
   0x6   :  { %5182 = sst [smem:[#allocation26_spill]] %s5155_s10 }
   0x7   :  { %5183 = sst [smem:[#allocation27_spill]] %s5156_s11 }
   0x8   :  { %5184 = sst [smem:[#allocation28_spill]] %s5163_s18 }
   0x9   :  { %5185 = sst [smem:[#allocation29_spill]] %s5164_s19 }
   0xa   :  { %24 = vsyncpa [#allocation3], 0 }
   0xb   :  { %26 = vsyncpa [#allocation3 + $0x1], 0 }
   0xc   :  { %27 = vsyncpa [#allocation6], 0 }
   0xd   :  { %28 = vsyncpa [#allocation9], 0 }
   0xe   :  { %29 = vsyncpa [#allocation4], 0 }
   0xf   :  { %31 = vsyncpa [#allocation4 + $0x1], 0  ;;  %s4563_s0 = smov 0   ;;  %s4565_s30 = smov 0  }
  0x10   :  { %s4567_s20 = smov 0   ;;  %s4569_s21 = smov 0  }
  0x11 LB: > { %5186 = sst [smem:[#allocation15_spill]] %s4427_s0  ;;  %s4584_s1 = sadd.s32 4294967295, %s4439_s21   ;;  %s4439_s21 = sphi %s4569_s21, %s5220_s21   ;;  %s4435_s20 = sphi %s4567_s20, %s5222_s20   ;;  %s4431_s30 = sphi %s4565_s30, %s5224_s30   ;;  %s4427_s0 = sphi %s4563_s0, %s5223_s0  }
  0x12   : > { %5187 = sst [smem:[#allocation16_spill]] %s4435_s20  ;;  %s3672_s22 = sadd.s32 4294967294, %s4439_s21  }
  0x13   : > { %5188 = sst [smem:[#allocation17_spill]] %s4439_s21  ;;  %p83_p0 = scmp.ne.s32.totalorder %s4431_s30, %s4427_s0 }
  0x14   : > { %p5169_p1 = scmp.eq.s32.totalorder %s4584_s1, 0  ;;  %p470_p3 = scmp.eq.s32.totalorder %s3672_s22, 1 }
  0x15   : > { %p3673_p5 = scmp.ge.s32.totalorder %s4439_s21, 1  ;;  %p477_p7 = scmp.lt.s32.totalorder %s4439_s21, 3 }
  0x16   : > { %p4593_p4 = por %p5169_p1, %p83_p0  ;;  %p4598_p6 = por %p470_p3, %p83_p0 }
  0x17   : > { %p4603_p8 = pnand %p3673_p5, %p477_p7  ;;  %s4441_s25 = smov [#allocation5]  }
  0x18   : > { %s5189_s2 = scalar_select %p4593_p4, 1, 0 }
  0x19   : > { %s5190_s23 = scalar_select %p4598_p6, 1, 0 }
  0x1a   : > { %s5192_s24 = scalar_select %p4603_p8, 1, 0 }
  0x1b   : > { %5191 = sst [smem:[#allocation18_spill]] %s5190_s23  ;;  %s510_s3 = sshll.u32 %s4441_s25, 4  ;;  %s511_s3 = int_to_ptr.vmem [resolvable:$true] %s510_s3 }
  0x1c   : > { %p4103_p9 = pneg %p4603_p8  ;;  %s4442_s27 = smov [#allocation7]  }
  0x1d   : > { %s523_s28 = sshll.u32 %s4442_s27, 4  ;;  %s4443_s29 = smov [#allocation8]   ;;  %s524_s28 = int_to_ptr.vmem [resolvable:$true] %s523_s28 }
  0x1e   : > { %p4612_p11 = pnand %p4103_p9, %p5169_p1  ;;  %s536_s22 = sshll.u32 %s4443_s29, 4  ;;  %s537_s22 = int_to_ptr.vmem [resolvable:$true] %s536_s22 }
  0x1f   : > { %s4272_s23 = scalar_lea.vmem %s511_s3, 512  ;;  %p4280_p5 = scmp.lt.s32.totalorder %s511_s3, %s511_s3 }
  0x20   : > { %p4263_p12 = pneg %p4612_p11  ;;  %p4273_p13 = scmp.ne.s32.totalorder %s511_s3, %s4272_s23 }
  0x21   : > { %p4281_p7 = scmp.lt.s32.totalorder %s4272_s23, %s4272_s23 }
  0x22   : > { %p4275_p0 = pnand %p4273_p13, %p4263_p12 }
  0x23   : > { %p4282_p9 = por %p4281_p7, %p4280_p5 }
  0x24   : > { %p4276_p3 = pneg %p4275_p0 }
  0x26   : > { %p4283_p10 = pnand %p4282_p9, %p4276_p3 }
  0x28   : > { %4286 = shalt.err (!%p4283_p10)
}
  0x29   : > { %s4444_s25 = smov 128   ;;  %s4445_s27 = smov 8  }
  0x2a   : > { %s5194_s9 = sld [smem:[#allocation25_spill]]  ;;  %s4298_s19 = scalar_lea.vmem %s524_s28, 384 }
  0x2b   : > { %p4299_p1 = scmp.ne.s32.totalorder %s524_s28, %s4298_s19  ;;  %p4306_p2 = scmp.lt.s32.totalorder %s524_s28, %s524_s28 }
  0x2c   : > { %p4307_p6 = scmp.lt.s32.totalorder %s4298_s19, %s4298_s19 }
  0x2d   : > { %p4301_p13 = pnand %p4299_p1, %p4263_p12 }
  0x2e   : > { %p4308_p5 = por %p4307_p6, %p4306_p2 }
  0x2f   : > { %p4302_p0 = pneg %p4301_p13 }
  0x30   : > { %4106 = dma.hbm_to_vmem [thread:$0]  (!%p4612_p11), %s5194_s9, 512, %s511_s3, [#allocation6], %s4444_s25, %s4444_s25, %s4445_s27  }
  0x31   : > { %p4309_p3 = pnand %p4308_p5, %p4302_p0 }
  0x33   : > { %4312 = shalt.err (!%p4309_p3)
}
  0x34   : > { %s5195_s10 = sld [smem:[#allocation26_spill]]  ;;  %s4324_s0 = scalar_lea.vmem %s537_s22, 512 }
  0x35   : > { %p4325_p10 = scmp.ne.s32.totalorder %s537_s22, %s4324_s0  ;;  %p4332_p9 = scmp.lt.s32.totalorder %s537_s22, %s537_s22 }
  0x36   : > { %p4333_p13 = scmp.lt.s32.totalorder %s4324_s0, %s4324_s0 }
  0x37   : > { %p4327_p7 = pnand %p4325_p10, %p4263_p12 }
  0x38   : > { %p4334_p4 = por %p4333_p13, %p4332_p9 }
  0x39   : > { %p4328_p1 = pneg %p4327_p7 }
  0x3a   : > { %4109 = dma.hbm_to_vmem [thread:$0]  (!%p4612_p11), %s5195_s10, 384, %s524_s28, [#allocation6], %s4444_s25, %s4444_s25, %s4445_s27  }
  0x3b   : > { %p4335_p2 = pnand %p4334_p4, %p4328_p1 }
  0x3d   : > { %4338 = shalt.err (!%p4335_p2)
}
  0x3e   : > { %s5196_s11 = sld [smem:[#allocation27_spill]]  ;;  %s4643_s18 = sadd.s32 1, %s4439_s21  }
  0x3f   : > { %5197 = sst [smem:[#allocation19_spill]] %s4643_s18  ;;  %s67_s28 = ssub.s32 %s4439_s21, %s4643_s18 }
  0x40   : > { %s70_s26 = sadd.s32 1, %s4435_s20  ;;  %p68_p4 = scmp.eq.s32.totalorder %s67_s28, 0 }
  0x41   : > { %p77_p6 = scmp.ne.s32.totalorder %s4435_s20, %s4431_s30  ;;  %p78_p12 = scmp.eq.s32.totalorder %s4439_s21, 0 }
  0x42   : > { %p4124_p0 = scmp.lt.s32.totalorder %s4439_s21, 2  ;;  %p5199_p3 = scmp.eq.s32.totalorder %s4584_s1, 1 }
  0x43   : > { %s4653_s29 = scalar_select %p68_p4, %s4435_s20, %s70_s26  }
  0x44   : > { %4112 = dma.hbm_to_vmem [thread:$0]  (!%p4612_p11), %s5196_s11, 512, %s537_s22, [#allocation9], %s4444_s25, %s4444_s25, %s4445_s27  }
  0x45   : > { %5198 = sst [smem:[#allocation20_spill]] %s4653_s29  ;;  %p79_p5 = por %p78_p12, %p77_p6 }
  0x46   : > { %p4657_p10 = por %p5199_p3, %p77_p6  ;;  %s579_s0 = sand.u32 1, %s4435_s20  }
  0x47   : > { %s3679_s19 = sshll.u32 %s4439_s21, 7  ;;  %s3678_s22 = sshll.u32 %s579_s0, 3 }
  0x48   : > { %s5200_s23 = scalar_select %p4657_p10, 1, 0 }
  0x49   : > { %s5201_s3 = sld [smem:[#allocation22_spill]]  ;;  %s583_s28 = scalar_lea.vmem [#allocation2], %s3678_s22 }
  0x4a   : > { %s590_s26 = sshll.u32 %s583_s28, 4  ;;  %p4668_p11 = pnand %p4124_p0, %p79_p5  ;;  %s591_s26 = int_to_ptr.vmem [resolvable:$true] %s590_s26 }
  0x4b   : > { %s580_s11 = scalar_lea.sflag [#allocation3], %s579_s0 }
  0x4c   : > { %p4341_p1 = pneg %p4668_p11 }
  0x4f   : > { %s4666_s9 = scalar_lea.hbm %s5201_s3, %s3679_s19  ;;  %s4344_s27 = scalar_lea.hbm %s5201_s3, 256 }
  0x50   : > { %s4339_s29 = scalar_lea.hbm %s4666_s9, 128  ;;  %p4345_p2 = scmp.lt.s32.totalorder %s4666_s9, %s5201_s3 }
  0x51   : > { %p4340_p7 = scmp.ne.s32.totalorder %s4666_s9, %s4339_s29  ;;  %p4346_p4 = scmp.lt.s32.totalorder %s4344_s27, %s4339_s29 }
  0x53   : > { %p4342_p9 = pnand %p4341_p1, %p4340_p7  ;;  %p4347_p6 = por %p4346_p4, %p4345_p2 }
  0x55   : > { %p4343_p13 = pneg %p4342_p9 }
  0x57   : > { %p4348_p12 = pnand %p4347_p6, %p4343_p13 }
  0x59   : > { %4351 = shalt.err (!%p4348_p12)
}
  0x5a   : > { %s4352_s28 = scalar_lea.vmem %s591_s26, 128  ;;  %s4446_s0 = smov [#allocation2]  }
  0x5b   : > { %p4353_p0 = scmp.ne.s32.totalorder %s591_s26, %s4352_s28  ;;  %s4357_s18 = sshll.u32 %s4446_s0, 4  ;;  %s4358_s18 = int_to_ptr.vmem [resolvable:$false] %s4357_s18 }
  0x5c   : > { %s4359_s21 = scalar_lea.vmem %s4358_s18, 256  ;;  %p4360_p7 = scmp.lt.s32.totalorder %s591_s26, %s4358_s18 }
  0x5d   : > { %p4355_p5 = pnand %p4353_p0, %p4341_p1  ;;  %p4361_p9 = scmp.lt.s32.totalorder %s4359_s21, %s4352_s28 }
  0x5f   : > { %p4356_p3 = pneg %p4355_p5  ;;  %p4362_p10 = por %p4361_p9, %p4360_p7 }
  0x61   : > { %p4363_p8 = pnand %p4362_p10, %p4356_p3 }
  0x63   : > { %4366 = shalt.err (!%p4363_p8)
}
  0x64   : > { %4116 = dma.hbm_to_vmem [thread:$0]  (!%p4668_p11), %s4666_s9, 128, %s591_s26, %s580_s11  }
  0x65   : > { %p5203_p13 = scmp.ne.s32.totalorder %s5192_s24, 0 }
  0x66   : > { %s4689_s20 = sand.u32 (!%p5203_p13), 1, %s4431_s30   ;;  %p5204_p1 = scmp.ne.s32.totalorder (!%p5203_p13), %s5189_s2, 0 }
  0x67   : > { %599 = sbr.rel (%p5203_p13) target bundleno = 6598 (0x19c6), region = 96  ;;  %s3681_s29 = sshll.u32 (!%p5203_p13), %s4689_s20, 3 }
  0x68   : > { %s602_s19 = scalar_lea.sflag (!%p5203_p13), [#allocation3], %s4689_s20  ;;  %s4693_s18 = scalar_lea.vmem (!%p5203_p13), [#allocation2], %s3681_s29 }
  0x6c   : > { %4410 = dma.done.wait (%p5204_p1), %s602_s19, 128  }
  0x6d   : > { %4412 = vsyncadd (%p5204_p1), %s602_s19, 4294967168  ;;  %p5205_p8 = scmp.eq.s32.totalorder %s4584_s1, 0 }
  0x6f   : > { %4414 = dma.done.wait (%p5205_p8), [#allocation6], 896   ;;  %p5206_p10 = pmov %p5205_p8 }
  0x70   : > { %p5207_p11 = pmov %p5205_p8 }
  0x71   : > { %4416 = vsyncadd (%p5206_p10), [#allocation6], 4294966400 }
  0x72   : > { %4418 = dma.done.wait (%p5207_p11), [#allocation9], 512   ;;  %p5208_p2 = pmov %p5205_p8 }
  0x73   : > { %p677_p4 = scmp.lt.s32.totalorder %s4584_s1, 1  ;;  %s5209_s2 = sld [smem:[#allocation21_spill]]  ;;  %vm685_vm0 = vcmask 261120   ;;  %v734_v14 = vld [vmem:[%s5149_s4 + $0x18] sm:$0xff]  ;;  %v733_v15 = vld [vmem:[%s5149_s4 + $0x10] sm:$0xff]  ;;  %v732_v16 = vld [vmem:[%s5149_s4 + $0x8] sm:$0xff] }
  0x74   : > { %4420 = vsyncadd (%p5208_p2), [#allocation9], 4294966784  ;;  %3885 = vmatprep.subr.mxu1 %v734_v14  ;;  %v731_v17 = vld [vmem:[%s5149_s4] sm:$0xff]  ;;  %s5210_s11 = sld [smem:[#allocation23_spill]]  ;;  %s4447_s26 = smov 96   ;;  %vm828_vm1 = vcmask 64512  }
  0x75   : > { %s678_s9 = scalar_select %p677_p4, %s4584_s1, 1  ;;  %3886 = vmatpush3.msra.mxu1 %v734_v14  ;;  %vm914_vm2 = vcmask 130048   ;;  %vm2095_vm3 = vcmask 195584   ;;  %vm4459_vm4 = vmmov 0  }
  0x76   : > { %3887 = vmatprep.subr.mxu1 %v733_v15  ;;  %s4448_s25 = smov 64   ;;  %s4449_s27 = smov 88  }
  0x77   : > { %s3769_s10 = sshll.u32 %s678_s9, 4  ;;  %3888 = vmatpush3.msra.mxu1 %v733_v15  ;;  %s4450_s22 = smov 120  }
  0x78   : > { %3889 = vmatprep.subr.mxu1 %v732_v16  ;;  %s4451_s29 = smov 56   ;;  %s4452_s19 = smov 80  }
  0x79   : > { %s681_s24 = scalar_lea.vmem %s5209_s2, %s3769_s10  ;;  %3890 = vmatpush3.msra.mxu1 %v732_v16  ;;  %s4453_s9 = smov 112  }
  0x7a   : > { %v4712_v0 = vld [vmem:[%s681_s24] sm:$0xff]  ;;  %v4714_v1 = vld [vmem:[%s681_s24 + $0x8] sm:$0xff]  ;;  %3891 = vmatprep.subr.mxu1 %v731_v17  ;;  %s5211_s24 = sld [smem:[#allocation24_spill]]  ;;  %s4454_s10 = smov 72  }
  0x7b   : > { %v686_v2 = vsel %vm685_vm0, %v4712_v0, 0.0  ;;  %v689_v3 = vsel %vm685_vm0, %v4714_v1, 0.0  ;;  %3892 = vmatpush3.msra.mxu1 %v731_v17  ;;  %v3688_v25 = vld [vmem:[%s5210_s11] ss:$0 sm:$0xff]  ;;  %s4455_s11 = smov 104   ;;  %s5212_s0 = sld [smem:[#allocation28_spill]] }
  0x7c   : > { %687 = vadd.xlane.f32.xlu0 %v686_v2  ;;  %p5214_p12 = scmp.ne.s32.totalorder %s5200_s23, 0  ;;  %s4460_s21 = smov [#allocation10]  }
  0x7d   : > { %s4371_s2 = sshll.u32 %s4460_s21, 4  ;;  %s4372_s2 = int_to_ptr.vmem [resolvable:$false] %s4371_s2 }
  0x80   : > { %690 = vadd.xlane.f32.xlu0 %v689_v3  ;;  %v3689_v27 = vld [vmem:[%s5211_s24] ss:$0 sm:$0xff]  ;;  %s4456_s24 = smov 48  }
 0x105   : > { %v688_v4 = vpop.xlane.xlu0 %687 }
 0x106   : > { %v693_v5 = vmul.f32 0.03125, %v688_v4  ;;  %v816_v4 = vld [vmem:[%s5150_s5] sm:$0xff] }
 0x108   : > { %v695_v6 = vsub.f32 %v4712_v0, %v693_v5 }
 0x109   : > { %v691_v7 = vpop.xlane.xlu0 %690 }
 0x10a   : > { %v694_v8 = vmul.f32 0.03125, %v691_v7  ;;  %v697_v9 = vmul.f32 %v695_v6, %v695_v6 }
 0x10c   : > { %v696_v10 = vsub.f32 %v4714_v1, %v694_v8  ;;  %v699_v11 = vsel %vm685_vm0, %v697_v9, 0.0 }
 0x10d   : > { %700 = vadd.xlane.f32.xlu1 %v699_v11 }
 0x10e   : > { %v698_v12 = vmul.f32 %v696_v10, %v696_v10 }
 0x110   : > { %v702_v13 = vsel %vm685_vm0, %v698_v12, 0.0 }
 0x111   : > { %703 = vadd.xlane.f32.xlu1 %v702_v13 }
 0x196   : > { %v701_v18 = vpop.xlane.xlu1 %700 }
 0x197   : > { %v705_v19 = vmul.f32 0.03125, %v701_v18 }
 0x199   : > { %v707_v20 = vadd.f32 1e-05, %v705_v19 }
 0x19a   : > { %v704_v21 = vpop.xlane.xlu1 %703 }
 0x19b   : > { %4181 = vrsqrt.f32 %v707_v20  ;;  %v706_v22 = vmul.f32 0.03125, %v704_v21 }
 0x19d   : > { %v708_v23 = vadd.f32 1e-05, %v706_v22 }
 0x19f   : > { %4183 = vrsqrt.f32 %v708_v23 }
 0x1a8   : > { %v4182_v24 = vpop.eup %4181 }
 0x1a9   : > { %v711_v26 = vmul.f32 %v4182_v24, %v695_v6 }
 0x1ab   : > { %v720_v28 = vmul.f32 %v3688_v25, %v711_v26 }
 0x1ac   : > { %v4184_v29 = vpop.eup %4183 }
 0x1ad   : > { %v712_v30 = vmul.f32 %v4184_v29, %v696_v10  ;;  %v729_v31 = vadd.f32 %v3689_v27, %v720_v28 }
 0x1af   : > { %v721_v32 = vmul.f32 %v3688_v25, %v712_v30  ;;  %3893 = vmatprep.mubr.msk.f32.mxu1 %vm685_vm0, %v729_v31  ;;  %v817_v25 = vld [vmem:[%s5150_s5 + $0x8] sm:$0xff] }
 0x1b1   : > { %v730_v33 = vadd.f32 %v3689_v27, %v721_v32 }
 0x1b3   : > { %3894 = vmatmul.mubr.msk.f32.vlgmr.msra.gmra.mxu1 %vm685_vm0, %v730_v33 }
 0x273   : > { %v4744_v34 = vpop.f32.mrf.mxu1 }
 0x274   : > { %826 = vrot.lane.b32.xlu0 %v4744_v34, %s4447_s26  ;;  %v4762_v39 = vmul.f32 0.35355338, %v4744_v34 }
 0x275   : > { %v4748_v35 = vpop.f32.mrf.mxu1 }
 0x276   : > { %824 = vrot.lane.b32.xlu1 %v4748_v35, %s4447_s26  ;;  %v4753_v36 = vmul.f32 0.35355338, %v4748_v35 }
 0x278   : > { %3900 = vmatprep.mubr.msk.f32.mxu1 %vm828_vm1, %v4753_v36 }
 0x2e6   : > { %v827_v37 = vpop.permute.xlu0 %826 }
 0x2e7   : > { %3896 = vmatprep.subr.msk.mxu1 %vm828_vm1, %v827_v37 }
 0x2e8   : > { %3897 = vmatpush3.xpose.msk.msra.mxu1 %vm828_vm1, %v827_v37  ;;  %v825_v38 = vpop.permute.xlu1 %824 }
 0x2e9   : > { %3898 = vmatprep.subr.msk.mxu1 %vm828_vm1, %v825_v38 }
 0x2ec   : > { %3899 = vmatpush3.xpose.msk.msra.mxu1 %vm828_vm1, %v825_v38 }
 0x2ef   : > { %3901 = vmatmul.mubr.msk.f32.vlgmr.msra.gmra.mxu1 %vm828_vm1, %v4762_v39 }
 0x3af   : > { %v3902_v40 = vpop.f32.mrf.mxu1 }
 0x3b0   : > { %v918_v41 = vsel %vm914_vm2, %v3902_v40, -inf }
 0x3b1   : > { %919 = vmax.xlane.f32.xlu0 %v918_v41  ;;  %v905_v42 = vpop.f32.mrf.mxu1 }
 0x3b2   : > { %v915_v43 = vsel %vm914_vm2, %v905_v42, -inf }
 0x3b3   : > { %916 = vmax.xlane.f32.xlu1 %v915_v43 }
 0x43a   : > { %v920_v44 = vpop.xlane.xlu0 %919 }
 0x43b   : > { %v922_v45 = vsub.f32 %v3902_v40, %v920_v44 }
 0x43c   : > { %v917_v46 = vpop.xlane.xlu1 %916 }
 0x43d   : > { %v925_v47 = vmul.f32 1.442695, %v922_v45  ;;  %v921_v48 = vsub.f32 %v905_v42, %v917_v46 }
 0x43f   : > { %4185 = vpow2.f32 %v925_v47  ;;  %v923_v49 = vmul.f32 1.442695, %v921_v48 }
 0x441   : > { %4187 = vpow2.f32 %v923_v49 }
 0x44c   : > { %v4186_v50 = vpop.eup %4185 }
 0x44d   : > { %v930_v51 = vsel %vm914_vm2, %v4186_v50, 0.0 }
 0x44e   : > { %v4188_v52 = vpop.eup %4187  ;;  %931 = vadd.xlane.f32.xlu1 %v930_v51 }
 0x44f   : > { %v927_v53 = vsel %vm914_vm2, %v4188_v52, 0.0 }
 0x450   : > { %928 = vadd.xlane.f32.xlu0 %v927_v53 }
 0x45f   : > { %937 = vrot.lane.b32.xlu1 %v4748_v35, %s4448_s25 }
 0x463   : > { %1030 = vrot.lane.b32.xlu1 %v4744_v34, %s4449_s27 }
 0x466   : > { %939 = vrot.lane.b32.xlu0 %v4744_v34, %s4448_s25  ;;  %s4457_s25 = smov 40  }
 0x467   : > { %1028 = vrot.lane.b32.xlu1 %v4748_v35, %s4449_s27 }
 0x46a   : > { %1024 = vrot.lane.b32.xlu0 %v4753_v36, %s4450_s22 }
 0x46b   : > { %1026 = vrot.lane.b32.xlu1 %v4762_v39, %s4450_s22 }
 0x4d7   : > { %v932_v54 = vpop.xlane.xlu1 %931 }
 0x4d8   : > { %4189 = vrcp.f32 %v932_v54 }
 0x4d9   : > { %v929_v55 = vpop.xlane.xlu0 %928 }
 0x4da   : > { %4191 = vrcp.f32 %v929_v55 }
 0x4db   : > { %v938_v56 = vpop.permute.xlu1 %937 }
 0x4dd   : > { %v940_v57 = vpop.permute.xlu0 %939 }
 0x4de   : > { %3903 = vmatprep.subr.mxu1 %v940_v57 }
 0x4df   : > { %3904 = vmatpush3.msra.mxu1 %v940_v57  ;;  %v1031_v58 = vpop.permute.xlu1 %1030 }
 0x4e0   : > { %3905 = vmatprep.subr.mxu1 %v938_v56 }
 0x4e1   : > { %3906 = vmatpush3.msra.mxu1 %v938_v56  ;;  %v1025_v63 = vpop.permute.xlu0 %1024 }
 0x4e2   : > { %3910 = vmatprep.subr.msk.mxu1 %vm828_vm1, %v1031_v58 }
 0x4e3   : > { %v1029_v2 = vpop.permute.xlu1 %1028 }
 0x4e5   : > { %v4190_v59 = vpop.eup %4189 }
 0x4e6   : > { %v936_v62 = vmul.f32 %v4190_v59, %v4186_v50 }
 0x4e7   : > { %v4192_v60 = vpop.eup %4191  ;;  %v1027_v3 = vpop.permute.xlu1 %1026 }
 0x4e8   : > { %v935_v61 = vmul.f32 %v4192_v60, %v4188_v52 }
 0x4ea   : > { %3907 = vmatprep.mubr.msk.f32.mxu1 %vm914_vm2, %v935_v61 }
 0x4eb   : > { %3908 = vmatmul.mubr.msk.f32.vlgmr.msra.gmra.mxu1 %vm914_vm2, %v936_v62 }
 0x4ec   : > { %3911 = vmatpush3.xpose.msk.msra.mxu1 %vm828_vm1, %v1031_v58  ;;  %3914 = vmatprep.mubr.msk.f32.mxu1 %vm828_vm1, %v1025_v63 }
 0x4ed   : > { %3912 = vmatprep.subr.msk.mxu1 %vm828_vm1, %v1029_v2 }
 0x4f0   : > { %3913 = vmatpush3.xpose.msk.msra.mxu1 %vm828_vm1, %v1029_v2 }
 0x4f1   : > { %3929 = vmatprep.subr.mxu1 %v816_v4 }
 0x4f3   : > { %3915 = vmatmul.mubr.msk.f32.vlgmr.msra.gmra.mxu1 %vm828_vm1, %v1027_v3 }
 0x4f4   : > { %3930 = vmatpush3.msra.mxu1 %v816_v4 }
 0x5ab   : > { %v3909_v5 = vpop.f32.mrf.mxu1 }
 0x5ad   : > { %v1015_v6 = vpop.f32.mrf.mxu1 }
 0x5ae   : > { %3931 = vmatprep.mubr.msk.f32.mxu1 %vm828_vm1, %v1015_v6 }
 0x5af   : > { %3932 = vmatmul.mubr.msk.f32.vlgmr.msra.gmra.mxu1 %vm828_vm1, %v3909_v5 }
 0x5b3   : > { %v3916_v7 = vpop.f32.mrf.mxu1 }
 0x5b4   : > { %v1118_v8 = vsel %vm914_vm2, %v3916_v7, -inf }
 0x5b5   : > { %1119 = vmax.xlane.f32.xlu1 %v1118_v8  ;;  %v1106_v9 = vpop.f32.mrf.mxu1 }
 0x5b6   : > { %v1115_v10 = vsel %vm914_vm2, %v1106_v9, -inf }
 0x5b7   : > { %1116 = vmax.xlane.f32.xlu0 %v1115_v10 }
 0x5c6   : > { %1137 = vrot.lane.b32.xlu1 %v4748_v35, %s4451_s29 }
 0x5ca   : > { %1392 = vrot.lane.b32.xlu1 %v4744_v34, %s4452_s19 }
 0x5ce   : > { %1390 = vrot.lane.b32.xlu1 %v4748_v35, %s4452_s19 }
 0x5d2   : > { %1388 = vrot.lane.b32.xlu1 %v4762_v39, %s4453_s9 }
 0x5d6   : > { %1673 = vrot.lane.b32.xlu1 %v4748_v35, %s4454_s10 }
 0x5da   : > { %1671 = vrot.lane.b32.xlu1 %v4762_v39, %s4455_s11 }
 0x63e   : > { %v1120_v11 = vpop.xlane.xlu1 %1119 }
 0x63f   : > { %v1122_v12 = vsub.f32 %v3916_v7, %v1120_v11 }
 0x640   : > { %v1117_v13 = vpop.xlane.xlu0 %1116 }
 0x641   : > { %v1125_v14 = vmul.f32 1.442695, %v1122_v12  ;;  %v1121_v15 = vsub.f32 %v1106_v9, %v1117_v13  ;;  %v818_v9 = vld [vmem:[%s5150_s5 + $0x10] sm:$0xff] }
 0x642   : > { %v1138_v24 = vpop.permute.xlu1 %1137 }
 0x643   : > { %4193 = vpow2.f32 %v1125_v14  ;;  %v1123_v16 = vmul.f32 1.442695, %v1121_v15 }
 0x645   : > { %4195 = vpow2.f32 %v1123_v16 }
 0x646   : > { %v1393_v30 = vpop.permute.xlu1 %1392 }
 0x64a   : > { %v1391_v33 = vpop.permute.xlu1 %1390 }
 0x64e   : > { %v1389_v38 = vpop.permute.xlu1 %1388 }
 0x650   : > { %v4194_v17 = vpop.eup %4193 }
 0x651   : > { %v1130_v18 = vsel %vm914_vm2, %v4194_v17, 0.0 }
 0x652   : > { %v4196_v19 = vpop.eup %4195  ;;  %1131 = vadd.xlane.f32.xlu0 %v1130_v18  ;;  %v1674_v40 = vpop.permute.xlu1 %1673 }
 0x653   : > { %v1127_v20 = vsel %vm914_vm2, %v4196_v19, 0.0 }
 0x656   : > { %1128 = vadd.xlane.f32.xlu0 %v1127_v20  ;;  %v1672_v41 = vpop.permute.xlu1 %1671 }
 0x66c   : > { %1139 = vrot.lane.b32.xlu0 %v4744_v34, %s4451_s29 }
 0x66f   : > { %v3933_v20 = vpop.f32.mrf.mxu1 }
 0x670   : > { %1386 = vrot.lane.b32.xlu0 %v4753_v36, %s4453_s9 }
 0x674   : > { %1675 = vrot.lane.b32.xlu0 %v4744_v34, %s4454_s10 }
 0x678   : > { %1669 = vrot.lane.b32.xlu0 %v4753_v36, %s4455_s11 }
 0x6db   : > { %v1132_v21 = vpop.xlane.xlu0 %1131 }
 0x6dc   : > { %4197 = vrcp.f32 %v1132_v21  ;;  %v1377_v21 = vpop.f32.mrf.mxu1 }
 0x6df   : > { %v1129_v22 = vpop.xlane.xlu0 %1128 }
 0x6e0   : > { %4199 = vrcp.f32 %v1129_v22 }
 0x6e3   : > { %v1140_v23 = vpop.permute.xlu0 %1139 }
 0x6e4   : > { %3917 = vmatprep.subr.mxu0 %v1140_v23 }
 0x6e5   : > { %3918 = vmatpush3.msra.mxu0 %v1140_v23 }
 0x6e6   : > { %3919 = vmatprep.subr.mxu0 %v1138_v24 }
 0x6e7   : > { %3920 = vmatpush3.msra.mxu0 %v1138_v24  ;;  %v1387_v31 = vpop.permute.xlu0 %1386 }
 0x6e8   : > { %3924 = vmatprep.subr.mxu0 %v817_v25 }
 0x6e9   : > { %v4198_v26 = vpop.eup %4197 }
 0x6ea   : > { %v1136_v29 = vmul.f32 %v4198_v26, %v4194_v17 }
 0x6eb   : > { %v1676_v37 = vpop.permute.xlu0 %1675 }
 0x6ed   : > { %v4200_v27 = vpop.eup %4199 }
 0x6ee   : > { %v1135_v28 = vmul.f32 %v4200_v27, %v4196_v19 }
 0x6ef   : > { %v1670_v39 = vpop.permute.xlu0 %1669 }
 0x6f0   : > { %3921 = vmatprep.mubr.msk.f32.mxu0 %vm914_vm2, %v1135_v28 }
 0x6f1   : > { %3922 = vmatmul.mubr.msk.f32.vlgmr.msra.gmra.mxu0 %vm914_vm2, %v1136_v29  ;;  %v819_v29 = vld [vmem:[%s5150_s5 + $0x18] sm:$0xff] }
 0x6f2   : > { %3925 = vmatpush3.msra.mxu0 %v817_v25 }
 0x6f3   : > { %3934 = vmatprep.subr.msk.mxu0 %vm828_vm1, %v1393_v30 }
 0x7b1   : > { %v3923_v32 = vpop.f32.mrf.mxu0 }
 0x7b3   : > { %v1215_v36 = vpop.f32.mrf.mxu0 }
 0x7b4   : > { %3926 = vmatprep.mubr.msk.f32.mxu0 %vm828_vm1, %v1215_v36 }
 0x7b5   : > { %3927 = vmatmul.mubr.msk.f32.vlgmr.msra.gmra.mxu0 %vm828_vm1, %v3923_v32 }
 0x7b6   : > { %3935 = vmatpush3.xpose.msk.msra.mxu0 %vm828_vm1, %v1393_v30  ;;  %3938 = vmatprep.mubr.msk.f32.mxu0 %vm828_vm1, %v1387_v31 }
 0x7b7   : > { %3936 = vmatprep.subr.msk.mxu0 %vm828_vm1, %v1391_v33 }
 0x7ba   : > { %3937 = vmatpush3.xpose.msk.msra.mxu0 %vm828_vm1, %v1391_v33 }
 0x7bb   : > { %3953 = vmatprep.subr.msk.mxu0 %vm828_vm1, %v1676_v37 }
 0x7bd   : > { %3939 = vmatmul.mubr.msk.f32.vlgmr.msra.gmra.mxu0 %vm828_vm1, %v1389_v38 }
 0x7be   : > { %3954 = vmatpush3.xpose.msk.msra.mxu0 %vm828_vm1, %v1676_v37  ;;  %3957 = vmatprep.mubr.msk.f32.mxu0 %vm828_vm1, %v1670_v39 }
 0x7bf   : > { %3955 = vmatprep.subr.msk.mxu0 %vm828_vm1, %v1674_v40 }
 0x7c2   : > { %3956 = vmatpush3.xpose.msk.msra.mxu0 %vm828_vm1, %v1674_v40 }
 0x7c5   : > { %3958 = vmatmul.mubr.msk.f32.vlgmr.msra.gmra.mxu0 %vm828_vm1, %v1672_v41  ;;  %v3724_v41 = vld [vmem:[%s5151_s6] ss:$0 sm:$0xff] }
 0x875   : > { %v4834_v42 = vpop.f32.mrf.mxu0 }
 0x876   : > { %v1383_v30 = vadd.f32 %v3933_v20, %v4834_v42 }
 0x877   : > { %v4836_v43 = vpop.f32.mrf.mxu0 }
 0x878   : > { %v1378_v32 = vadd.f32 %v1377_v21, %v4836_v43 }
 0x87d   : > { %v3940_v44 = vpop.f32.mrf.mxu0 }
 0x87e   : > { %v1480_v45 = vsel %vm914_vm2, %v3940_v44, -inf }
 0x87f   : > { %1481 = vmax.xlane.f32.xlu1 %v1480_v45  ;;  %v1468_v46 = vpop.f32.mrf.mxu0 }
 0x880   : > { %v1477_v47 = vsel %vm914_vm2, %v1468_v46, -inf }
 0x881   : > { %1478 = vmax.xlane.f32.xlu0 %v1477_v47 }
 0x885   : > { %v3959_v48 = vpop.f32.mrf.mxu0 }
 0x886   : > { %v1763_v3 = vsel %vm914_vm2, %v3959_v48, -inf }
 0x887   : > { %v1751_v49 = vpop.f32.mrf.mxu0 }
 0x888   : > { %v1760_v50 = vsel %vm914_vm2, %v1751_v49, -inf }
 0x890   : > { %1499 = vrot.lane.b32.xlu1 %v4748_v35, %s4456_s24 }
 0x8b4   : > { %1761 = vmax.xlane.f32.xlu1 %v1760_v50 }
 0x908   : > { %v1482_v51 = vpop.xlane.xlu1 %1481 }
 0x909   : > { %v1484_v52 = vsub.f32 %v3940_v44, %v1482_v51 }
 0x90a   : > { %v1479_v53 = vpop.xlane.xlu0 %1478 }
 0x90b   : > { %v1487_v54 = vmul.f32 1.442695, %v1484_v52  ;;  %v1483_v55 = vsub.f32 %v1468_v46, %v1479_v53 }
 0x90c   : > { %v1500_v61 = vpop.permute.xlu1 %1499 }
 0x90d   : > { %4201 = vpow2.f32 %v1487_v54  ;;  %v1485_v56 = vmul.f32 1.442695, %v1483_v55 }
 0x90f   : > { %4203 = vpow2.f32 %v1485_v56 }
 0x91a   : > { %v4202_v57 = vpop.eup %4201 }
 0x91b   : > { %v1492_v58 = vsel %vm914_vm2, %v4202_v57, 0.0 }
 0x91c   : > { %v4204_v59 = vpop.eup %4203  ;;  %1493 = vadd.xlane.f32.xlu0 %v1492_v58 }
 0x91d   : > { %v1489_v60 = vsel %vm914_vm2, %v4204_v59, 0.0 }
 0x920   : > { %1490 = vadd.xlane.f32.xlu0 %v1489_v60  ;;  %v2009_v60 = vld [vmem:[#allocation5 + $0x10] sm:$0xff] }
 0x936   : > { %1501 = vrot.lane.b32.xlu0 %v4744_v34, %s4456_s24  ;;  %s4373_s24 = scalar_lea.vmem %s4372_s2, 512 }
 0x93d   : > { %v1762_v62 = vpop.xlane.xlu1 %1761 }
 0x93e   : > { %v1766_v63 = vsub.f32 %v1751_v49, %v1762_v62  ;;  %v2094_v62 = vld [vmem:[#allocation7 + $0x10] sm:$0xff] }
 0x940   : > { %v1768_v2 = vmul.f32 1.442695, %v1766_v63  ;;  %v2093_v63 = vld [vmem:[#allocation7 + $0x8] sm:$0xff] }
 0x942   : > { %4205 = vpow2.f32 %v1768_v2  ;;  %v2008_v2 = vld [vmem:[#allocation5 + $0x8] sm:$0xff] }
 0x94f   : > { %v4206_v4 = vpop.eup %4205 }
 0x950   : > { %v1772_v5 = vsel %vm914_vm2, %v4206_v4, 0.0 }
 0x955   : > { %1764 = vmax.xlane.f32.xlu0 %v1763_v3  ;;  %v2007_v3 = vld [vmem:[#allocation5] sm:$0xff] }
 0x959   : > { %1773 = vadd.xlane.f32.xlu0 %v1772_v5  ;;  %v684_v5 = vld [vmem:[%s4693_s18] sm:$0xff] }
 0x96f   : > { %1784 = vrot.lane.b32.xlu0 %v4744_v34, %s4457_s25 }
 0x9a5   : > { %v1494_v6 = vpop.xlane.xlu0 %1493 }
 0x9a6   : > { %4207 = vrcp.f32 %v1494_v6 }
 0x9a9   : > { %v1491_v7 = vpop.xlane.xlu0 %1490 }
 0x9aa   : > { %4209 = vrcp.f32 %v1491_v7 }
 0x9ad   : > { %v1502_v8 = vpop.permute.xlu0 %1501 }
 0x9ae   : > { %3941 = vmatprep.subr.mxu1 %v1502_v8 }
 0x9af   : > { %3942 = vmatpush3.msra.mxu1 %v1502_v8 }
 0x9b0   : > { %3943 = vmatprep.subr.mxu1 %v1500_v61 }
 0x9b1   : > { %3944 = vmatpush3.msra.mxu1 %v1500_v61  ;;  %v4458_v61 = vmov 0.0  }
 0x9b2   : > { %3948 = vmatprep.subr.mxu1 %v818_v9 }
 0x9b3   : > { %v4208_v10 = vpop.eup %4207 }
 0x9b4   : > { %v1498_v13 = vmul.f32 %v4208_v10, %v4202_v57 }
 0x9b7   : > { %v4210_v11 = vpop.eup %4209 }
 0x9b8   : > { %v1497_v12 = vmul.f32 %v4210_v11, %v4204_v59  ;;  %v2010_v59 = vld [vmem:[#allocation5 + $0x18] sm:$0xff] }
 0x9b9   : > { %3972 = vmatprep.subr.mxu0 %v2010_v59 }
 0x9ba   : > { %3945 = vmatprep.mubr.msk.f32.mxu1 %vm914_vm2, %v1497_v12  ;;  %3973 = vmatpush3.msra.mxu0 %v2010_v59  ;;  %v2170_v59 = vld [vmem:[#allocation8 + $0x8] sm:$0xff] }
 0x9bb   : > { %3946 = vmatmul.mubr.msk.f32.vlgmr.msra.gmra.mxu1 %vm914_vm2, %v1498_v13  ;;  %3974 = vmatprep.subr.mxu0 %v2009_v60 }
 0x9bc   : > { %3949 = vmatpush3.msra.mxu1 %v818_v9  ;;  %3975 = vmatpush3.msra.mxu0 %v2009_v60 }
 0x9bd   : > { %3976 = vmatprep.subr.mxu0 %v2008_v2 }
 0x9be   : > { %3977 = vmatpush3.msra.mxu0 %v2008_v2 }
 0x9bf   : > { %3978 = vmatprep.subr.mxu0 %v2007_v3 }
 0x9c0   : > { %3979 = vmatpush3.msra.mxu0 %v2007_v3 }
 0x9de   : > { %v1765_v34 = vpop.xlane.xlu0 %1764 }
 0x9df   : > { %v1767_v14 = vsub.f32 %v3959_v48, %v1765_v34  ;;  %v3725_v34 = vld [vmem:[%s5152_s7] ss:$0 sm:$0xff] }
 0x9e1   : > { %v1770_v15 = vmul.f32 1.442695, %v1767_v14 }
 0x9e2   : > { %v1774_v16 = vpop.xlane.xlu0 %1773 }
 0x9e3   : > { %4211 = vpow2.f32 %v1770_v15 }
 0x9e4   : > { %4213 = vrcp.f32 %v1774_v16 }
 0x9e6   : > { %v1785_v17 = vpop.permute.xlu0 %1784 }
 0x9e7   : > { %3960 = vmatprep.subr.mxu1 %v1785_v17 }
 0x9f0   : > { %v4212_v18 = vpop.eup %4211 }
 0x9f1   : > { %v1775_v19 = vsel %vm914_vm2, %v4212_v18, 0.0  ;;  %v4214_v22 = vpop.eup %4213 }
 0x9f2   : > { %1776 = vadd.xlane.f32.xlu1 %v1775_v19  ;;  %v1780_v26 = vmul.f32 %v4214_v22, %v4206_v4  ;;  %v2092_v4 = vld [vmem:[#allocation7] sm:$0xff] }
 0xa03   : > { %1782 = vrot.lane.b32.xlu1 %v4748_v35, %s4457_s25  ;;  %s3685_s25 = sshll.u32 %s4689_s20, 4 }
 0xa7b   : > { %v3947_v23 = vpop.f32.mrf.mxu1  ;;  %v1777_v24 = vpop.xlane.xlu1 %1776 }
 0xa7c   : > { %4215 = vrcp.f32 %v1777_v24 }
 0xa7d   : > { %v1577_v25 = vpop.f32.mrf.mxu1 }
 0xa7e   : > { %3950 = vmatprep.mubr.msk.f32.mxu1 %vm828_vm1, %v1577_v25 }
 0xa7f   : > { %3951 = vmatmul.mubr.msk.f32.vlgmr.msra.gmra.mxu1 %vm828_vm1, %v3947_v23  ;;  %v1783_v27 = vpop.permute.xlu1 %1782 }
 0xa80   : > { %3961 = vmatpush3.msra.mxu1 %v1785_v17  ;;  %3964 = vmatprep.mubr.msk.f32.mxu1 %vm914_vm2, %v1780_v26 }
 0xa81   : > { %3962 = vmatprep.subr.mxu1 %v1783_v27 }
 0xa82   : > { %3963 = vmatpush3.msra.mxu1 %v1783_v27 }
 0xa83   : > { %3967 = vmatprep.subr.mxu1 %v819_v29 }
 0xa89   : > { %v4216_v35 = vpop.eup %4215 }
 0xa8a   : > { %v1781_v28 = vmul.f32 %v4216_v35, %v4212_v18  ;;  %v3726_v18 = vld [vmem:[%s5153_s8] ss:$0 sm:$0xff] }
 0xa8c   : > { %3965 = vmatmul.mubr.msk.f32.vlgmr.msra.gmra.mxu1 %vm914_vm2, %v1781_v28 }
 0xa8d   : > { %3968 = vmatpush3.msra.mxu1 %v819_v29 }
 0xa8e   : > { %3983 = vmatprep.subr.mxu1 %v4458_v61 }
 0xb3f   : > { %v3952_v31 = vpop.f32.mrf.mxu1 }
 0xb40   : > { %v1668_v33 = vadd.f32 %v3952_v31, %v1383_v30 }
 0xb41   : > { %v1658_v36 = vpop.f32.mrf.mxu1 }
 0xb42   : > { %v1667_v37 = vadd.f32 %v1658_v36, %v1378_v32 }
 0xb4c   : > { %v3966_v38 = vpop.f32.mrf.mxu1 }
 0xb4e   : > { %v1860_v39 = vpop.f32.mrf.mxu1 }
 0xb4f   : > { %3969 = vmatprep.mubr.msk.f32.mxu1 %vm828_vm1, %v1860_v39 }
 0xb50   : > { %3970 = vmatmul.mubr.msk.f32.vlgmr.msra.gmra.mxu1 %vm828_vm1, %v3966_v38 }
 0xb51   : > { %3984 = vmatpush3.msra.mxu1 %v2094_v62  ;;  %3989 = vmatprep.mubr.msk.f32.mxu1 %vm4459_vm4, %v4458_v61 }
 0xb52   : > { %3985 = vmatprep.subr.mxu1 %v4458_v61 }
 0xb53   : > { %3986 = vmatpush3.msra.mxu1 %v2093_v63 }
 0xb54   : > { %3987 = vmatprep.subr.mxu1 %v4458_v61 }
 0xb55   : > { %3988 = vmatpush3.msra.mxu1 %v2092_v4 }
 0xb56   : > { %3990 = vmatmul.mubr.msk.f32.vlgmr.msra.gmra.mxu1 %vm2095_vm3, %v684_v5 }
 0xc10   : > { %v3971_v40 = vpop.f32.mrf.mxu1 }
 0xc11   : > { %v1951_v44 = vadd.f32 %v3971_v40, %v1668_v33 }
 0xc12   : > { %v1941_v45 = vpop.f32.mrf.mxu1 }
 0xc13   : > { %v1960_v42 = vadd.f32 %v3724_v41, %v1951_v44  ;;  %v1950_v46 = vadd.f32 %v1941_v45, %v1667_v37 }
 0xc15   : > { %v4870_v43 = vadd.f32 %v1960_v42, %v4714_v1  ;;  %v1959_v47 = vadd.f32 %v3724_v41, %v1950_v46 }
 0xc16   : > { %v4896_v21 = vpop.f32.mrf.mxu1 }
 0xc17   : > { %v4873_v48 = vadd.f32 %v1959_v47, %v4712_v0  ;;  %v1966_v49 = vsel %vm685_vm0, %v4870_v43, 0.0  ;;  %3992 = vmatprep.subr.msk.mxu1 %vm828_vm1, %v4896_v21 }
 0xc18   : > { %1967 = vadd.xlane.f32.xlu0 %v1966_v49  ;;  %v3991_v22 = vpop.f32.mrf.mxu1  ;;  %3993 = vmatpush3.xpose.msk.msra.mxu1 %vm828_vm1, %v4896_v21 }
 0xc19   : > { %v1963_v50 = vsel %vm685_vm0, %v4873_v48, 0.0 }
 0xc1a   : > { %1964 = vadd.xlane.f32.xlu1 %v1963_v50 }
 0xca1   : > { %v1968_v51 = vpop.xlane.xlu0 %1967 }
 0xca2   : > { %v1970_v52 = vmul.f32 0.03125, %v1968_v51 }
 0xca3   : > { %v1965_v53 = vpop.xlane.xlu1 %1964 }
 0xca4   : > { %v1972_v54 = vsub.f32 %v4870_v43, %v1970_v52  ;;  %v1969_v55 = vmul.f32 0.03125, %v1965_v53 }
 0xca6   : > { %v1971_v1 = vsub.f32 %v4873_v48, %v1969_v55  ;;  %v1974_v56 = vmul.f32 %v1972_v54, %v1972_v54 }
 0xca8   : > { %v1978_v0 = vsel %vm685_vm0, %v1974_v56, 0.0  ;;  %v1973_v57 = vmul.f32 %v1971_v1, %v1971_v1 }
 0xca9   : > { %1979 = vadd.xlane.f32.xlu1 %v1978_v0 }
 0xcaa   : > { %v1975_v58 = vsel %vm685_vm0, %v1973_v57, 0.0 }
 0xcab   : > { %1976 = vadd.xlane.f32.xlu0 %v1975_v58 }
 0xcc1   : > { %2369 = vrot.lane.b32.xlu0 %v4896_v21, %s4450_s22 }
 0xd32   : > { %v1980_v6 = vpop.xlane.xlu1 %1979 }
 0xd33   : > { %v1982_v7 = vmul.f32 0.03125, %v1980_v6 }
 0xd34   : > { %v1977_v8 = vpop.xlane.xlu0 %1976 }
 0xd35   : > { %v1984_v9 = vadd.f32 1e-05, %v1982_v7  ;;  %v1981_v10 = vmul.f32 0.03125, %v1977_v8 }
 0xd37   : > { %4217 = vrsqrt.f32 %v1984_v9  ;;  %v1983_v11 = vadd.f32 1e-05, %v1981_v10 }
 0xd38   : > { %v2370_v23 = vpop.permute.xlu0 %2369 }
 0xd39   : > { %4219 = vrsqrt.f32 %v1983_v11  ;;  %4002 = vmatprep.subr.msk.mxu1 %vm828_vm1, %v2370_v23 }
 0xd44   : > { %v4218_v12 = vpop.eup %4217 }
 0xd45   : > { %v1988_v13 = vmul.f32 %v4218_v12, %v1972_v54 }
 0xd46   : > { %v4220_v14 = vpop.eup %4219 }
 0xd47   : > { %v1987_v15 = vmul.f32 %v4220_v14, %v1971_v1  ;;  %v1997_v16 = vmul.f32 %v3725_v34, %v1988_v13 }
 0xd49   : > { %v1996_v17 = vmul.f32 %v3725_v34, %v1987_v15  ;;  %v2006_v20 = vadd.f32 %v3726_v18, %v1997_v16  ;;  %v2169_v34 = vld [vmem:[#allocation8] sm:$0xff] }
 0xd4b   : > { %v2005_v19 = vadd.f32 %v3726_v18, %v1996_v17 }
 0xd4d   : > { %3980 = vmatprep.mubr.msk.f32.mxu0 %vm685_vm0, %v2005_v19 }
 0xd4e   : > { %3981 = vmatmul.mubr.msk.f32.vlgmr.msra.gmra.mxu0 %vm685_vm0, %v2006_v20 }
 0xe0e   : > { %v3982_v24 = vpop.f32.mrf.mxu0 }
 0xe0f   : > { %v4907_v27 = vmul.f32 0.35355338, %v3982_v24 }
 0xe10   : > { %v2083_v25 = vpop.f32.mrf.mxu0 }
 0xe11   : > { %v4905_v26 = vmul.f32 0.35355338, %v2083_v25 }
 0xe13   : > { %2365 = vrot.lane.b32.xlu1 %v4905_v26, %s4450_s22  ;;  %3994 = vmatprep.mubr.msk.f32.mxu1 %vm828_vm1, %v4905_v26 }
 0xe14   : > { %3995 = vmatmul.mubr.msk.f32.vlgmr.msra.gmra.mxu1 %vm828_vm1, %v4907_v27 }
 0xe15   : > { %4003 = vmatpush3.xpose.msk.msra.mxu1 %vm828_vm1, %v2370_v23 }
 0xe16   : > { %4012 = vmatprep.subr.mxu1 %v2170_v59 }
 0xe17   : > { %2367 = vrot.lane.b32.xlu1 %v4907_v27, %s4450_s22 }
 0xe85   : > { %v2366_v35 = vpop.permute.xlu1 %2365 }
 0xe86   : > { %4004 = vmatprep.mubr.msk.f32.mxu1 %vm828_vm1, %v2366_v35 }
 0xe89   : > { %v2368_v28 = vpop.permute.xlu1 %2367 }
 0xe8a   : > { %4005 = vmatmul.mubr.msk.f32.vlgmr.msra.gmra.mxu1 %vm828_vm1, %v2368_v28 }
 0xe8b   : > { %4013 = vmatpush3.msra.mxu1 %v2170_v59 }
 0xed4   : > { %v3996_v29 = vpop.f32.mrf.mxu1 }
 0xed5   : > { %v2262_v30 = vsel %vm828_vm1, %v3996_v29, -inf }
 0xed6   : > { %2263 = vmax.xlane.f32.xlu0 %v2262_v30  ;;  %v2250_v31 = vpop.f32.mrf.mxu1 }
 0xed7   : > { %v2259_v32 = vsel %vm828_vm1, %v2250_v31, -inf }
 0xed8   : > { %2260 = vmax.xlane.f32.xlu1 %v2259_v32 }
 0xf4a   : > { %v4006_v33 = vpop.f32.mrf.mxu1 }
 0xf4b   : > { %v2455_v38 = vsel %vm828_vm1, %v4006_v33, -inf }
 0xf4c   : > { %v2443_v36 = vpop.f32.mrf.mxu1 }
 0xf4d   : > { %v2452_v37 = vsel %vm828_vm1, %v2443_v36, -inf }
 0xf4e   : > { %2453 = vmax.xlane.f32.xlu0 %v2452_v37 }
 0xf52   : > { %2456 = vmax.xlane.f32.xlu0 %v2455_v38 }
 0xf5f   : > { %v2264_v39 = vpop.xlane.xlu0 %2263 }
 0xf60   : > { %v2266_v40 = vsub.f32 %v3996_v29, %v2264_v39 }
 0xf61   : > { %v2261_v41 = vpop.xlane.xlu1 %2260 }
 0xf62   : > { %v2269_v44 = vmul.f32 1.442695, %v2266_v40  ;;  %v2265_v45 = vsub.f32 %v2250_v31, %v2261_v41 }
 0xf64   : > { %4221 = vpow2.f32 %v2269_v44  ;;  %v2267_v42 = vmul.f32 1.442695, %v2265_v45 }
 0xf66   : > { %4223 = vpow2.f32 %v2267_v42 }
 0xf71   : > { %v4222_v46 = vpop.eup %4221 }
 0xf72   : > { %v2274_v47 = vsel %vm828_vm1, %v4222_v46, 0.0 }
 0xf73   : > { %v4224_v49 = vpop.eup %4223  ;;  %2275 = vadd.xlane.f32.xlu0 %v2274_v47 }
 0xf74   : > { %v2271_v50 = vsel %vm828_vm1, %v4224_v49, 0.0 }
 0xf75   : > { %2272 = vadd.xlane.f32.xlu1 %v2271_v50 }
 0xfd7   : > { %v2454_v51 = vpop.xlane.xlu0 %2453 }
 0xfd8   : > { %v2458_v52 = vsub.f32 %v2443_v36, %v2454_v51 }
 0xfda   : > { %v2460_v53 = vmul.f32 1.442695, %v2458_v52  ;;  %v2171_v52 = vld [vmem:[#allocation8 + $0x10] sm:$0xff] }
 0xfdb   : > { %v2457_v54 = vpop.xlane.xlu0 %2456 }
 0xfdc   : > { %4225 = vpow2.f32 %v2460_v53  ;;  %v2459_v55 = vsub.f32 %v4006_v33, %v2457_v54 }
 0xfde   : > { %v2462_v1 = vmul.f32 1.442695, %v2459_v55 }
 0xfe0   : > { %4227 = vpow2.f32 %v2462_v1 }
 0xfe9   : > { %v4226_v56 = vpop.eup %4225 }
 0xfea   : > { %v2464_v0 = vsel %vm828_vm1, %v4226_v56, 0.0 }
 0xfeb   : > { %2465 = vadd.xlane.f32.xlu1 %v2464_v0 }
 0xfed   : > { %v4228_v57 = vpop.eup %4227 }
 0xfee   : > { %v2467_v58 = vsel %vm828_vm1, %v4228_v57, 0.0 }
 0xfef   : > { %2468 = vadd.xlane.f32.xlu0 %v2467_v58 }
 0xffc   : > { %2281 = vrot.lane.b32.xlu1 %v4896_v21, %s4447_s26  ;;  %v2276_v2 = vpop.xlane.xlu0 %2275  ;;  %s3770_s26 = sshll.u32 %s4584_s1, 8  ;;  %s3545_s1 = scalar_lea.sflag [#allocation4], %s4689_s20 }
 0xffe   : > { %v2273_v60 = vpop.xlane.xlu1 %2272 }
 0xfff   : > { %4229 = vrcp.f32 %v2273_v60 }
0x1000   : > { %2724 = vrot.lane.b32.xlu1 %v4896_v21, %s4453_s9  ;;  %4231 = vrcp.f32 %v2276_v2 }
0x1004   : > { %2720 = vrot.lane.b32.xlu1 %v4905_v26, %s4453_s9 }
0x1005   : > { %2474 = vrot.lane.b32.xlu0 %v4896_v21, %s4449_s27  ;;  %s676_s27 = scalar_lea.vmem [#allocation10], %s3685_s25 }
0x1006   : > { %s3558_s22 = sshll.u32 %s676_s27, 4  ;;  %s5099_s22 = int_to_ptr.vmem [resolvable:$true] %s3558_s22 }
0x1007   : > { %s4367_s29 = scalar_lea.vmem %s5099_s22, 256  ;;  %p4374_p3 = scmp.lt.s32.totalorder %s5099_s22, %s4372_s2 }
0x1008   : > { %2722 = vrot.lane.b32.xlu1 %v4907_v27, %s4453_s9  ;;  %p4368_p6 = scmp.ne.s32.totalorder %s5099_s22, %s4367_s29  ;;  %p4375_p7 = scmp.lt.s32.totalorder %s4373_s24, %s4367_s29 }
0x100a   : > { %p4369_p0 = pnand %p4368_p6, %p5214_p12  ;;  %p4376_p9 = por %p4375_p7, %p4374_p3 }
0x100c   : > { %v4230_v62 = vpop.eup %4229  ;;  %p4370_p5 = pneg %p4369_p0 }
0x100d   : > { %v2279_v63 = vmul.f32 %v4230_v62, %v4224_v49  ;;  %v4232_v4 = vpop.eup %4231 }
0x100e   : > { %v2280_v7 = vmul.f32 %v4232_v4, %v4222_v46  ;;  %p4377_p13 = pnand %p4376_p9, %p4370_p5 }
0x100f   : > { %3999 = vmatprep.mubr.msk.f32.mxu0 %vm828_vm1, %v2279_v63 }
0x1074   : > { %v2466_v3 = vpop.xlane.xlu1 %2465 }
0x1075   : > { %4233 = vrcp.f32 %v2466_v3 }
0x1078   : > { %v2469_v5 = vpop.xlane.xlu0 %2468  ;;  %v2282_v6 = vpop.permute.xlu1 %2281 }
0x1079   : > { %4235 = vrcp.f32 %v2469_v5  ;;  %3997 = vmatprep.subr.mxu0 %v2282_v6 }
0x107a   : > { %3998 = vmatpush3.msra.mxu0 %v2282_v6 }
0x107b   : > { %4000 = vmatmul.mubr.msk.f32.vlgmr.msra.gmra.mxu0 %vm828_vm1, %v2280_v7  ;;  %v2172_v7 = vld [vmem:[#allocation8 + $0x18] sm:$0xff] }
0x107c   : > { %v2475_v8 = vpop.permute.xlu0 %2474  ;;  %v2725_v9 = vpop.permute.xlu1 %2724 }
0x107d   : > { %4007 = vmatprep.subr.mxu0 %v2475_v8  ;;  %4022 = vmatprep.subr.msk.mxu1 %vm828_vm1, %v2725_v9 }
0x107e   : > { %4008 = vmatpush3.msra.mxu0 %v2475_v8 }
0x107f   : > { %4017 = vmatprep.subr.mxu0 %v2169_v34 }
0x1080   : > { %v2721_v17 = vpop.permute.xlu1 %2720 }
0x1082   : > { %v4234_v10 = vpop.eup %4233 }
0x1083   : > { %v2472_v11 = vmul.f32 %v4234_v10, %v4226_v56 }
0x1084   : > { %v2723_v19 = vpop.permute.xlu1 %2722 }
0x1085   : > { %4009 = vmatprep.mubr.msk.f32.mxu0 %vm828_vm1, %v2472_v11 }
0x1086   : > { %v4236_v12 = vpop.eup %4235 }
0x1087   : > { %v2473_v13 = vmul.f32 %v4236_v12, %v4228_v57 }
0x1089   : > { %4010 = vmatmul.mubr.msk.f32.vlgmr.msra.gmra.mxu0 %vm828_vm1, %v2473_v13 }
0x108a   : > { %4018 = vmatpush3.msra.mxu0 %v2169_v34 }
0x113b   : > { %v4001_v14 = vpop.f32.mrf.mxu0 }
0x113d   : > { %v2356_v15 = vpop.f32.mrf.mxu0 }
0x113e   : > { %4019 = vmatprep.mubr.msk.f32.mxu0 %vm828_vm1, %v2356_v15 }
0x113f   : > { %4020 = vmatmul.mubr.msk.f32.vlgmr.msra.gmra.mxu0 %vm828_vm1, %v4001_v14 }
0x1149   : > { %v4011_v16 = vpop.f32.mrf.mxu0 }
0x114b   : > { %v2549_v18 = vpop.f32.mrf.mxu0 }
0x114c   : > { %4014 = vmatprep.mubr.msk.f32.mxu1 %vm828_vm1, %v2549_v18 }
0x114d   : > { %4015 = vmatmul.mubr.msk.f32.vlgmr.msra.gmra.mxu1 %vm828_vm1, %v4011_v16 }
0x114e   : > { %4023 = vmatpush3.xpose.msk.msra.mxu1 %vm828_vm1, %v2725_v9  ;;  %4024 = vmatprep.mubr.msk.f32.mxu1 %vm828_vm1, %v2721_v17 }
0x114f   : > { %4032 = vmatprep.subr.mxu1 %v2171_v52 }
0x1151   : > { %4025 = vmatmul.mubr.msk.f32.vlgmr.msra.gmra.mxu1 %vm828_vm1, %v2723_v19 }
0x1152   : > { %4033 = vmatpush3.msra.mxu1 %v2171_v52 }
0x11ff   : > { %v4021_v20 = vpop.f32.mrf.mxu0 }
0x1201   : > { %v2711_v53 = vpop.f32.mrf.mxu0 }
0x120d   : > { %v4016_v22 = vpop.f32.mrf.mxu1 }
0x120e   : > { %v4950_v23 = vadd.f32 %v4021_v20, %v4016_v22 }
0x120f   : > { %v4952_v24 = vpop.f32.mrf.mxu1 }
0x1210   : > { %v2712_v18 = vadd.f32 %v2711_v53, %v4952_v24 }
0x1211   : > { %v4026_v25 = vpop.f32.mrf.mxu1 }
0x1212   : > { %v2810_v35 = vsel %vm828_vm1, %v4026_v25, -inf }
0x1213   : > { %2811 = vmax.xlane.f32.xlu1 %v2810_v35  ;;  %v2798_v28 = vpop.f32.mrf.mxu1 }
0x1214   : > { %v2807_v29 = vsel %vm828_vm1, %v2798_v28, -inf }
0x1215   : > { %2808 = vmax.xlane.f32.xlu0 %v2807_v29 }
0x1224   : > { %3000 = vrot.lane.b32.xlu1 %v4896_v21, %s4455_s11 }
0x1228   : > { %2996 = vrot.lane.b32.xlu1 %v4905_v26, %s4455_s11 }
0x122c   : > { %2998 = vrot.lane.b32.xlu1 %v4907_v27, %s4455_s11 }
0x129c   : > { %v2812_v30 = vpop.xlane.xlu1 %2811 }
0x129d   : > { %v2814_v31 = vsub.f32 %v4026_v25, %v2812_v30 }
0x129e   : > { %v2809_v32 = vpop.xlane.xlu0 %2808 }
0x129f   : > { %v2817_v33 = vmul.f32 1.442695, %v2814_v31  ;;  %v2813_v36 = vsub.f32 %v2798_v28, %v2809_v32 }
0x12a0   : > { %v3001_v45 = vpop.permute.xlu1 %3000 }
0x12a1   : > { %4237 = vpow2.f32 %v2817_v33  ;;  %v2815_v37 = vmul.f32 1.442695, %v2813_v36 }
0x12a3   : > { %4239 = vpow2.f32 %v2815_v37 }
0x12a4   : > { %v2997_v47 = vpop.permute.xlu1 %2996 }
0x12a8   : > { %v2999_v51 = vpop.permute.xlu1 %2998 }
0x12ae   : > { %v4238_v38 = vpop.eup %4237 }
0x12af   : > { %v2822_v39 = vsel %vm828_vm1, %v4238_v38, 0.0 }
0x12b0   : > { %v4240_v40 = vpop.eup %4239  ;;  %2823 = vadd.xlane.f32.xlu0 %v2822_v39 }
0x12b1   : > { %v2819_v41 = vsel %vm828_vm1, %v4240_v40, 0.0 }
0x12b4   : > { %2820 = vadd.xlane.f32.xlu0 %v2819_v41 }
0x12ca   : > { %2829 = vrot.lane.b32.xlu0 %v4896_v21, %s4452_s19 }
0x1339   : > { %v2824_v26 = vpop.xlane.xlu0 %2823 }
0x133a   : > { %4241 = vrcp.f32 %v2824_v26 }
0x133d   : > { %v2821_v27 = vpop.xlane.xlu0 %2820 }
0x133e   : > { %4243 = vrcp.f32 %v2821_v27  ;;  %v3334_v27 = vld [vmem:[%s5160_s15 + $0x38] sm:$0xff] }
0x1341   : > { %v2830_v44 = vpop.permute.xlu0 %2829 }
0x1342   : > { %4027 = vmatprep.subr.mxu0 %v2830_v44 }
0x1343   : > { %4028 = vmatpush3.msra.mxu0 %v2830_v44  ;;  %v3333_v44 = vld [vmem:[%s5160_s15 + $0x30] sm:$0xff] }
0x1344   : > { %4037 = vmatprep.subr.msk.mxu0 %vm828_vm1, %v3001_v45 }
0x1347   : > { %v4242_v42 = vpop.eup %4241 }
0x1348   : > { %v2828_v50 = vmul.f32 %v4242_v42, %v4238_v38  ;;  %v3331_v42 = vld [vmem:[%s5160_s15 + $0x20] sm:$0xff] }
0x134b   : > { %v4244_v46 = vpop.eup %4243 }
0x134c   : > { %v2827_v49 = vmul.f32 %v4244_v46, %v4240_v40  ;;  %v3330_v46 = vld [vmem:[%s5160_s15 + $0x18] sm:$0xff] }
0x134e   : > { %4029 = vmatprep.mubr.msk.f32.mxu0 %vm828_vm1, %v2827_v49  ;;  %v3328_v49 = vld [vmem:[%s5160_s15 + $0x8] sm:$0xff] }
0x134f   : > { %4030 = vmatmul.mubr.msk.f32.vlgmr.msra.gmra.mxu0 %vm828_vm1, %v2828_v50  ;;  %v3327_v50 = vld [vmem:[%s5160_s15] sm:$0xff] }
0x1350   : > { %4038 = vmatpush3.xpose.msk.msra.mxu0 %vm828_vm1, %v3001_v45  ;;  %4039 = vmatprep.mubr.msk.f32.mxu0 %vm828_vm1, %v2997_v47  ;;  %v3332_v45 = vld [vmem:[%s5160_s15 + $0x28] sm:$0xff]  ;;  %v3329_v47 = vld [vmem:[%s5160_s15 + $0x10] sm:$0xff] }
0x1351   : > { %4047 = vmatprep.subr.mxu0 %v2172_v7 }
0x1353   : > { %4040 = vmatmul.mubr.msk.f32.vlgmr.msra.gmra.mxu0 %vm828_vm1, %v2999_v51  ;;  %v3457_v51 = vld [vmem:[%s5162_s17 + $0x78] sm:$0xff] }
0x1354   : > { %4048 = vmatpush3.msra.mxu0 %v2172_v7  ;;  %v3454_v7 = vld [vmem:[%s5162_s17 + $0x60] sm:$0xff] }
0x1355   : > { %4052 = vmatprep.subr.mxu0 %v3457_v51 }
0x140f   : > { %v4031_v54 = vpop.f32.mrf.mxu0 }
0x1411   : > { %v2904_v55 = vpop.f32.mrf.mxu0 }
0x1412   : > { %4034 = vmatprep.mubr.msk.f32.mxu1 %vm828_vm1, %v2904_v55 }
0x1413   : > { %4035 = vmatmul.mubr.msk.f32.vlgmr.msra.gmra.mxu1 %vm828_vm1, %v4031_v54  ;;  %v4041_v1 = vpop.f32.mrf.mxu0 }
0x1414   : > { %v3086_v56 = vsel %vm828_vm1, %v4041_v1, -inf }
0x1415   : > { %3087 = vmax.xlane.f32.xlu1 %v3086_v56  ;;  %v3074_v0 = vpop.f32.mrf.mxu0 }
0x1416   : > { %v3083_v57 = vsel %vm828_vm1, %v3074_v0, -inf }
0x1417   : > { %3084 = vmax.xlane.f32.xlu0 %v3083_v57  ;;  %v3759_v57 = vld [vmem:[%s5158_s13] ss:$0 sm:$0xff] }
0x149e   : > { %v3088_v58 = vpop.xlane.xlu1 %3087 }
0x149f   : > { %v3090_v59 = vsub.f32 %v4041_v1, %v3088_v58 }
0x14a0   : > { %v3085_v60 = vpop.xlane.xlu0 %3084 }
0x14a1   : > { %v3093_v62 = vmul.f32 1.442695, %v3090_v59  ;;  %v3089_v63 = vsub.f32 %v3074_v0, %v3085_v60  ;;  %v3760_v59 = vld [vmem:[%s5159_s14] ss:$0 sm:$0xff] }
0x14a3   : > { %4245 = vpow2.f32 %v3093_v62  ;;  %v3091_v2 = vmul.f32 1.442695, %v3089_v63 }
0x14a5   : > { %4247 = vpow2.f32 %v3091_v2 }
0x14b0   : > { %v4246_v3 = vpop.eup %4245 }
0x14b1   : > { %v3098_v4 = vsel %vm828_vm1, %v4246_v3, 0.0 }
0x14b2   : > { %v4248_v5 = vpop.eup %4247  ;;  %3099 = vadd.xlane.f32.xlu0 %v3098_v4 }
0x14b3   : > { %v3095_v6 = vsel %vm828_vm1, %v4248_v5, 0.0 }
0x14b6   : > { %3096 = vadd.xlane.f32.xlu0 %v3095_v6  ;;  %v3455_v6 = vld [vmem:[%s5162_s17 + $0x68] sm:$0xff] }
0x14cc   : > { %3105 = vrot.lane.b32.xlu0 %v4896_v21, %s4454_s10  ;;  %s5213_s10 = sld [smem:[#allocation29_spill]] }
0x14d2   : > { %s5097_s11 = scalar_lea.hbm %s5213_s10, %s3770_s26 }
0x14d3   : > { %v4036_v8 = vpop.f32.mrf.mxu1 }
0x14d4   : > { %v2995_v9 = vadd.f32 %v4036_v8, %v4950_v23  ;;  %v3758_v23 = vld [vmem:[%s5157_s12] ss:$0 sm:$0xff]  ;;  %v3452_v8 = vld [vmem:[%s5162_s17 + $0x50] sm:$0xff] }
0x14d5   : > { %v2985_v21 = vpop.f32.mrf.mxu1 }
0x14d6   : > { %v2994_v20 = vadd.f32 %v2985_v21, %v2712_v18  ;;  %v3443_v21 = vld [vmem:[%s5162_s17 + $0x8] sm:$0xff] }
0x153b   : > { %v3100_v10 = vpop.xlane.xlu0 %3099 }
0x153c   : > { %4249 = vrcp.f32 %v3100_v10  ;;  %v3450_v10 = vld [vmem:[%s5162_s17 + $0x40] sm:$0xff] }
0x153f   : > { %v3097_v11 = vpop.xlane.xlu0 %3096 }
0x1540   : > { %4251 = vrcp.f32 %v3097_v11  ;;  %v3449_v11 = vld [vmem:[%s5162_s17 + $0x38] sm:$0xff] }
0x1543   : > { %v3106_v12 = vpop.permute.xlu0 %3105 }
0x1544   : > { %4042 = vmatprep.subr.mxu1 %v3106_v12 }
0x1545   : > { %4043 = vmatpush3.msra.mxu1 %v3106_v12  ;;  %v3448_v12 = vld [vmem:[%s5162_s17 + $0x30] sm:$0xff] }
0x1546   : > { %3377 = vmatprep.subr.mxu1 %v3334_v27 }
0x1549   : > { %v4250_v13 = vpop.eup %4249 }
0x154a   : > { %v3104_v15 = vmul.f32 %v4250_v13, %v4246_v3  ;;  %v3447_v13 = vld [vmem:[%s5162_s17 + $0x28] sm:$0xff] }
0x154d   : > { %v4252_v34 = vpop.eup %4251 }
0x154e   : > { %v3103_v14 = vmul.f32 %v4252_v34, %v4248_v5  ;;  %v3456_v5 = vld [vmem:[%s5162_s17 + $0x70] sm:$0xff]  ;;  %v3446_v34 = vld [vmem:[%s5162_s17 + $0x20] sm:$0xff] }
0x1550   : > { %4044 = vmatprep.mubr.msk.f32.mxu1 %vm828_vm1, %v3103_v14  ;;  %v3445_v14 = vld [vmem:[%s5162_s17 + $0x18] sm:$0xff] }
0x1551   : > { %4045 = vmatmul.mubr.msk.f32.vlgmr.msra.gmra.mxu1 %vm828_vm1, %v3104_v15  ;;  %v3444_v15 = vld [vmem:[%s5162_s17 + $0x10] sm:$0xff] }
0x1552   : > { %3417 = vmatprep.mubr.f32.mxu1 %v4458_v61  ;;  %3378 = vmatpush1.msra.mxu1 %v3333_v44 }
0x1553   : > { %3379 = vmatprep.subr.mxu1 %v3332_v45 }
0x1554   : > { %3380 = vmatpush1.msra.mxu1 %v3331_v42 }
0x1555   : > { %3381 = vmatprep.subr.mxu1 %v3330_v46 }
0x1556   : > { %3382 = vmatpush1.msra.mxu1 %v3329_v47  ;;  %v3763_v47 = vld [vmem:[%s5212_s0] ss:$0 sm:$0xff] }
0x1557   : > { %3383 = vmatprep.subr.mxu1 %v3328_v49 }
0x1558   : > { %3384 = vmatpush1.msra.mxu1 %v3327_v50 }
0x1611   : > { %v4046_v16 = vpop.f32.mrf.mxu1 }
0x1613   : > { %v3180_v17 = vpop.f32.mrf.mxu1 }
0x1614   : > { %4049 = vmatprep.mubr.msk.f32.mxu0 %vm828_vm1, %v3180_v17  ;;  %v3337_v17 = vlaneseq }
0x1615   : > { %4050 = vmatmul.mubr.msk.f32.vlgmr.msra.gmra.mxu0 %vm828_vm1, %v4046_v16  ;;  %v3442_v16 = vld [vmem:[%s5162_s17] sm:$0xff] }
0x1616   : > { %4053 = vmatpush3.msra.mxu0 %v3457_v51  ;;  %v3338_v18 = vshrl.u32 %v3337_v17, 7 }
0x1617   : > { %4054 = vmatprep.subr.mxu0 %v3456_v5 }
0x1618   : > { %4055 = vmatpush3.msra.mxu0 %v3456_v5 }
0x1619   : > { %4056 = vmatprep.subr.mxu0 %v3455_v6 }
0x161a   : > { %4057 = vmatpush3.msra.mxu0 %v3455_v6 }
0x161b   : > { %4058 = vmatprep.subr.mxu0 %v3454_v7 }
0x161c   : > { %4059 = vmatpush3.msra.mxu0 %v3454_v7 }
0x16d5   : > { %v4051_v19 = vpop.f32.mrf.mxu0 }
0x16d6   : > { %v3271_v22 = vadd.f32 %v4051_v19, %v2995_v9  ;;  %v3451_v9 = vld [vmem:[%s5162_s17 + $0x48] sm:$0xff]  ;;  %v3343_v19 = vsub.s32 1, %v3338_v18 }
0x16d7   : > { %v3261_v25 = vpop.f32.mrf.mxu0 }
0x16d8   : > { %v3270_v35 = vadd.f32 %v3261_v25, %v2994_v20  ;;  %v3280_v28 = vadd.f32 %v3758_v23, %v3271_v22  ;;  %v3335_v20 = vld [vmem:[%s5161_s16] sm:$0x3] }
0x16d9   : > { %v3344_v22 = vrot.slane %v3335_v20, %v3343_v19 }
0x16da   : > { %v3279_v29 = vadd.f32 %v3758_v23, %v3270_v35  ;;  %v4994_v31 = vadd.f32 %v3280_v28, %v4870_v43 }
0x16dc   : > { %v4991_v30 = vadd.f32 %v3279_v29, %v4873_v48  ;;  %v3286_v32 = vsel %vm685_vm0, %v4994_v31, 0.0 }
0x16de   : > { %v3283_v24 = vsel %vm685_vm0, %v4991_v30, 0.0 }
0x16df   : > { %3284 = vadd.xlane.f32.xlu1 %v3283_v24 }
0x16e3   : > { %3287 = vadd.xlane.f32.xlu1 %v3286_v32 }
0x1768   : > { %v3285_v33 = vpop.xlane.xlu1 %3284 }
0x1769   : > { %v3289_v36 = vmul.f32 0.03125, %v3285_v33 }
0x176b   : > { %v3291_v37 = vsub.f32 %v4991_v30, %v3289_v36  ;;  %v3339_v36 = vsub.s32 0, %v3338_v18 }
0x176c   : > { %v3288_v38 = vpop.xlane.xlu1 %3287 }
0x176d   : > { %v3290_v39 = vmul.f32 0.03125, %v3288_v38  ;;  %v3293_v40 = vmul.f32 %v3291_v37, %v3291_v37 }
0x176f   : > { %v3292_v48 = vsub.f32 %v4994_v31, %v3290_v39  ;;  %v3295_v43 = vsel %vm685_vm0, %v3293_v40, 0.0 }
0x1770   : > { %3296 = vadd.xlane.f32.xlu1 %v3295_v43 }
0x1771   : > { %v3294_v41 = vmul.f32 %v3292_v48, %v3292_v48 }
0x1773   : > { %v3298_v26 = vsel %vm685_vm0, %v3294_v41, 0.0 }
0x1774   : > { %3299 = vadd.xlane.f32.xlu1 %v3298_v26 }
0x17f9   : > { %v3297_v52 = vpop.xlane.xlu1 %3296 }
0x17fa   : > { %v3301_v53 = vmul.f32 0.03125, %v3297_v52 }
0x17fc   : > { %v3303_v54 = vadd.f32 1e-05, %v3301_v53 }
0x17fd   : > { %v3300_v55 = vpop.xlane.xlu1 %3299 }
0x17fe   : > { %4253 = vrsqrt.f32 %v3303_v54  ;;  %v3302_v1 = vmul.f32 0.03125, %v3300_v55 }
0x1800   : > { %v3304_v56 = vadd.f32 1e-05, %v3302_v1 }
0x1802   : > { %4255 = vrsqrt.f32 %v3304_v56 }
0x180b   : > { %v4254_v0 = vpop.eup %4253 }
0x180c   : > { %v3307_v58 = vmul.f32 %v4254_v0, %v3291_v37  ;;  %v3340_v37 = vrot.slane %v3335_v20, %v3339_v36 }
0x180e   : > { %v3316_v60 = vmul.f32 %v3759_v57, %v3307_v58 }
0x180f   : > { %v4256_v62 = vpop.eup %4255 }
0x1810   : > { %v3325_v63 = vadd.f32 %v3760_v59, %v3316_v60  ;;  %v3308_v2 = vmul.f32 %v4256_v62, %v3292_v48 }
0x1812   : > { %3761 = vmatmul.mubr.msk.f32.vlgmr.msra.gmra.mxu1 %vm685_vm0, %v3325_v63  ;;  %v3317_v3 = vmul.f32 %v3759_v57, %v3308_v2 }
0x1813   : > { %3423 = vmatprep.mubr.f32.mxu1 %v4458_v61  ;;  %v3453_v61 = vld [vmem:[%s5162_s17 + $0x58] sm:$0xff] }
0x1814   : > { %v3326_v4 = vadd.f32 %v3760_v59, %v3317_v3  ;;  %4060 = vmatprep.subr.mxu0 %v3453_v61 }
0x1815   : > { %4061 = vmatpush3.msra.mxu0 %v3453_v61 }
0x1816   : > { %3762 = vmatmul.mubr.msk.f32.gmra.mxu1 %vm685_vm0, %v3326_v4  ;;  %4062 = vmatprep.subr.mxu0 %v3452_v8 }
0x1817   : > { %4063 = vmatpush3.msra.mxu0 %v3452_v8 }
0x1818   : > { %4064 = vmatprep.subr.mxu0 %v3451_v9 }
0x1819   : > { %4065 = vmatpush3.msra.mxu0 %v3451_v9 }
0x181a   : > { %4066 = vmatprep.subr.mxu0 %v3450_v10 }
0x181b   : > { %4067 = vmatpush3.msra.mxu0 %v3450_v10 }
0x181c   : > { %4068 = vmatprep.subr.mxu0 %v3449_v11 }
0x181d   : > { %4069 = vmatpush3.msra.mxu0 %v3449_v11 }
0x181e   : > { %4070 = vmatprep.subr.mxu0 %v3448_v12 }
0x181f   : > { %4071 = vmatpush3.msra.mxu0 %v3448_v12 }
0x1820   : > { %4072 = vmatprep.subr.mxu0 %v3447_v13 }
0x1821   : > { %4073 = vmatpush3.msra.mxu0 %v3447_v13 }
0x1822   : > { %4074 = vmatprep.subr.mxu0 %v3446_v34 }
0x1823   : > { %4075 = vmatpush3.msra.mxu0 %v3446_v34 }
0x1824   : > { %4076 = vmatprep.subr.mxu0 %v3445_v14 }
0x1825   : > { %4077 = vmatpush3.msra.mxu0 %v3445_v14 }
0x1826   : > { %4078 = vmatprep.subr.mxu0 %v3444_v15 }
0x1827   : > { %4079 = vmatpush3.msra.mxu0 %v3444_v15 }
0x1828   : > { %4080 = vmatprep.subr.mxu0 %v3443_v21 }
0x1829   : > { %4081 = vmatpush3.msra.mxu0 %v3443_v21 }
0x182a   : > { %4082 = vmatprep.subr.mxu0 %v3442_v16 }
0x182b   : > { %4083 = vmatpush3.msra.mxu0 %v3442_v16 }
0x18d2   : > { %v3419_v23 = vpop.f32.mrf.mxu1 }
0x18d3   : > { %v3420_v48 = vadd.f32 %v3419_v23, %v3340_v37 }
0x18d4   : > { %v3421_v25 = vpop.f32.mrf.mxu1 }
0x18d5   : > { %v3422_v35 = vadd.f32 %v3421_v25, %v3344_v22 }
0x18d6   : > { %v3425_v28 = vpop.f32.mrf.mxu1 }
0x18d7   : > { %v3432_v29 = vmul.f32 0.70710677, %v3422_v35  ;;  %v3430_v39 = vmul.f32 0.5, %v3422_v35  ;;  %v3426_v45 = vadd.f32 %v3425_v28, %v3340_v37 }
0x18d8   : > { %v3427_v24 = vpop.f32.mrf.mxu1 }
0x18d9   : > { %4257 = verf.f32 %v3432_v29  ;;  %v3428_v32 = vadd.f32 %v3427_v24, %v3344_v22 }
0x18db   : > { %v3433_v33 = vmul.f32 0.70710677, %v3428_v32  ;;  %v3431_v26 = vmul.f32 0.5, %v3428_v32 }
0x18dd   : > { %4259 = verf.f32 %v3433_v33 }
0x18e6   : > { %v4258_v38 = vpop.eup %4257 }
0x18e7   : > { %v3436_v40 = vadd.f32 1.0, %v4258_v38 }
0x18e9   : > { %v3438_v43 = vmul.f32 %v3436_v40, %v3430_v39 }
0x18ea   : > { %v4260_v41 = vpop.eup %4259 }
0x18eb   : > { %v3437_v27 = vadd.f32 1.0, %v4260_v41  ;;  %v3440_v44 = vmul.f32 %v3438_v43, %v3420_v48 }
0x18ed   : > { %v3439_v42 = vmul.f32 %v3437_v27, %v3431_v26  ;;  %4084 = vmatprep.mubr.f32.mxu0 %v3440_v44 }
0x18ef   : > { %v3441_v46 = vmul.f32 %v3439_v42, %v3426_v45 }
0x18f1   : > { %4085 = vmatmul.mubr.f32.vlgmr.msra.gmra.mxu0 %v3441_v46 }
0x19b1   : > { %v4086_v49 = vpop.f32.mrf.mxu0 }
0x19b2   : > { %v3537_v50 = vadd.f32 %v4086_v49, %v3763_v47 }
0x19b3   : > { %v3531_v51 = vpop.f32.mrf.mxu0 }
0x19b4   : > { %v3541_v52 = vadd.f32 %v3537_v50, %v4994_v31  ;;  %v3532_v53 = vadd.f32 %v3763_v47, %v3531_v51 }
0x19b6   : > { %3543 = vst.msk [vmem:[%s676_s27 + $0x8] sm:$0xff] %vm685_vm0, %v3541_v52  ;;  %v3540_v54 = vadd.f32 %v3532_v53, %v4991_v30 }
0x19b8   : > { %3542 = vst.msk [vmem:[%s676_s27] sm:$0xff] %vm685_vm0, %v3540_v54 }
0x19b9   : > { %4380 = shalt.err (!%p4377_p13)
}
0x19ba   : > { %s4381_s25 = scalar_lea.hbm %s5097_s11, 256  ;;  %s4385_s0 = scalar_lea.hbm %s5213_s10, 512 }
0x19bb   : > { %p4382_p1 = scmp.ne.s32.totalorder %s5097_s11, %s4381_s25  ;;  %p4386_p11 = scmp.lt.s32.totalorder %s5097_s11, %s5213_s10 }
0x19bc   : > { %p4387_p2 = scmp.lt.s32.totalorder %s4385_s0, %s4381_s25 }
0x19bd   : > { %p4383_p8 = pnand %p4382_p1, %p5214_p12 }
0x19be   : > { %p4388_p4 = por %p4387_p2, %p4386_p11 }
0x19bf   : > { %p4384_p10 = pneg %p4383_p8 }
0x19c1   : > { %p4389_p6 = pnand %p4388_p4, %p4384_p10 }
0x19c3   : > { %4392 = shalt.err (!%p4389_p6)
}
0x19c4   : > { %s4461_s19 = smov 128   ;;  %s4462_s9 = smov 8  }
0x19c5   : > { %4101 = dma.vmem_to_hbm [thread:$0]  (%p5214_p12), %s5099_s22, 256, %s5097_s11, %s3545_s1, %s4461_s19, %s4461_s19, %s4462_s9  }
0x19c6 PF: > { %s5215_s29 = sld [smem:[#allocation15_spill]] }
0x19c7   : > { %s5216_s21 = sld [smem:[#allocation18_spill]] }
0x19c8   : > { %s5217_s2 = sld [smem:[#allocation17_spill]] }
0x19cc   : > { %s3573_s24 = sand.u32 1, %s5215_s29  }
0x19cd   : > { %p5218_p0 = scmp.ne.s32.totalorder %s5216_s21, 0  ;;  %s3574_s25 = scalar_lea.sflag [#allocation4], %s3573_s24 }
0x19ce   : > { %p5219_p5 = scmp.ge.s32.totalorder %s5217_s2, 2 }
0x19d0   : > { %p4118_p3 = pnand %p5219_p5, %p5218_p0 }
0x19d2   : > { %p4119_p7 = pneg %p4118_p3 }
0x19d4   : > { %4422 = dma.done.wait (%p4119_p7), %s3574_s25, 256  }
0x19d5   : > { %4424 = vsyncadd (%p4119_p7), %s3574_s25, 4294967040  ;;  %s5220_s21 = sld [smem:[#allocation19_spill]]  ;;  %s5223_s0 = smov %s4431_s30 }
0x19d6   : > { %s5221_s28 = sld [smem:[#allocation16_spill]] }
0x19d7   : > { %s5222_s20 = sld [smem:[#allocation20_spill]] }
0x19db   : > { %p34_p9 = scmp.ge.s32.totalorder %s5220_s21, 4  }
0x19dc   : > { %s5224_s30 = smov %s5221_s28 }
0x19dd   :  { %36 = sbr.rel (!%p34_p9) target bundleno = 17 (0x11), region = 156 }
0x19e2   :  { %3579 = vsyncpa [#allocation3], 1 }
0x19e3   :  { %3581 = vsyncpa [#allocation3 + $0x1], 1 }
0x19e4   :  { %3582 = vsyncpa [#allocation6], 1 }
0x19e5   :  { %3583 = vsyncpa [#allocation9], 1 }
0x19e6   :  { %3584 = vsyncpa [#allocation4], 1 }
0x19e7   :  { %3586 = vsyncpa [#allocation4 + $0x1], 1 }

</bundles_post_ra>
